<compile_context>
chip_gen: v5e
topology: v5e:2x2
jax: 0.10.0
libtpu: 0.0.40
codegen_flags: <defaults>
</compile_context>

<pallas_src>
import numpy as np
import jax
import jax.numpy as jnp
from jax.experimental import pallas as pl
from jax.experimental.pallas import tpu as pltpu

# Model hyper-parameters (small, consistent with CTransformer.__init__)
EMB = 32          # emb
HEADS = 4         # heads
DEPTH = 2         # depth
SEQ = 8           # seq_length (== t of the input)
NUM_CLASSES = 10  # num_classes
BATCH = 2
FF_MULT = 4
LN_EPS = 1e-5     # nn.LayerNorm default eps
# dropout = 0.0 -> identity; nn.Embedding(num_tokens) token table is unused by forward().


# ------------------------------ Pallas kernel -------------------------------

def _ctransformer_kernel(x_ref, pos_ref,
                         wqkv_ref, wu_ref, bu_ref,
                         g1_ref, beta1_ref, w1_ref, bf1_ref,
                         w2_ref, bf2_ref, g2_ref, beta2_ref,
                         wc_ref, bc_ref, o_ref):
    """Fused CTransformer forward for the whole batch in one kernel invocation."""
    x = x_ref[...].astype(jnp.float32)                      # (B, T, E)
    b, t, e = x.shape
    he = HEADS * e
    n = b * t

    # positional-embedding add (first t rows of the table; dropout p=0.0 -> identity)
    h = x + pos_ref[:t, :][None, :, :]
    hf = h.reshape(n, e)                                     # (B*T, E)

    def layernorm(z, gamma, beta):
        mu = jnp.mean(z, axis=-1, keepdims=True)
        var = jnp.mean((z - mu) ** 2, axis=-1, keepdims=True)
        return (z - mu) * jax.lax.rsqrt(var + LN_EPS) * gamma + beta

    for d in range(DEPTH):                                   # static unroll over layers
        # ---- hoist per-layer parameter reads once ----
        w_qkv = wqkv_ref[d]                                  # (E, 3*H*E) bf16, q/k pre-scaled
        w_u = wu_ref[d]                                      # (H*E, E)   bf16
        b_u = bu_ref[d]                                      # (1, E)     f32
        g1, be1 = g1_ref[d], beta1_ref[d]                    # (1, E)
        w_1, b_1 = w1_ref[d], bf1_ref[d]                     # (E, 4E) bf16 / (1, 4E)
        w_2, b_2 = w2_ref[d], bf2_ref[d]                     # (4E, E) bf16 / (1, E)
        g2, be2 = g2_ref[d], beta2_ref[d]                    # (1, E)

        # ---- SelfAttention ----
        # fused Q/K/V projection: one lane-dense (n, E) @ (E, 3*H*E) matmul
        qkv = jnp.dot(hf.astype(jnp.bfloat16), w_qkv,
                      preferred_element_type=jnp.float32)    # (n, 3*H*E)

        heads_out = []
        for hi in range(HEADS):                              # static unroll over heads
            q3 = qkv[:, hi * e:(hi + 1) * e].reshape(b, t, e)
            k3 = qkv[:, he + hi * e:he + (hi + 1) * e].reshape(b, t, e)
            v3 = qkv[:, 2 * he + hi * e:2 * he + (hi + 1) * e].reshape(b, t, e)

            s = jnp.einsum('bqe,bke->bqk', q3, k3,
                           preferred_element_type=jnp.float32)          # (B, T, T)
            s = s - jnp.max(s, axis=-1, keepdims=True)
            p = jnp.exp(s)
            p = p / jnp.sum(p, axis=-1, keepdims=True)
            heads_out.append(jnp.einsum('bqk,bke->bqe', p, v3,
                                        preferred_element_type=jnp.float32))

        # head-major lane concat -> (B, T, H*E); matches torch transpose(1,2).view(b,t,h*e)
        o = jnp.concatenate(heads_out, axis=-1).reshape(n, he)          # (n, 128)

        # single 128-deep unify matmul
        attended = jnp.dot(o.astype(jnp.bfloat16), w_u,
                           preferred_element_type=jnp.float32) + b_u    # (n, E)

        # residual + LayerNorm 1
        y = layernorm(attended + hf, g1, be1)

        # feed-forward (bf16 MXU operands, f32 accumulate)
        h1 = jnp.dot(y.astype(jnp.bfloat16), w_1,
                     preferred_element_type=jnp.float32) + b_1
        h1 = jnp.maximum(h1, 0.0)
        ff = jnp.dot(h1.astype(jnp.bfloat16), w_2,
                     preferred_element_type=jnp.float32) + b_2

        # residual + LayerNorm 2
        hf = layernorm(ff + y, g2, be2)

    # ---- classifier head: max-pool over seq, Linear(E -> classes), log_softmax ----
    pooled = jnp.max(hf.reshape(b, t, e), axis=1)            # (B, E)
    logits = jnp.dot(pooled.astype(jnp.bfloat16), wc_ref[...],
                     preferred_element_type=jnp.float32) + bc_ref[...]
    logits = logits - jnp.max(logits, axis=-1, keepdims=True)
    lse = jnp.log(jnp.sum(jnp.exp(logits), axis=-1, keepdims=True))
    o_ref[...] = (logits - lse).astype(o_ref.dtype)


# ------------------------------ Pallas wrapper -------------------------------

_VMEM_SPEC = pl.BlockSpec(memory_space=pltpu.MemorySpace.VMEM)


@jax.jit
def ctransformer_forward(x, kp):
    b = x.shape[0]
    args = (x, kp['pos_emb'],
            kp['wqkv'], kp['wu'], kp['bu'],
            kp['g1'], kp['beta1'], kp['w1'], kp['bf1'],
            kp['w2'], kp['bf2'], kp['g2'], kp['beta2'],
            kp['wc'], kp['bc'])
    return pl.pallas_call(
        _ctransformer_kernel,
        out_shape=jax.ShapeDtypeStruct((b, NUM_CLASSES), x.dtype),
        in_specs=[_VMEM_SPEC] * len(args),
        out_specs=_VMEM_SPEC,
        compiler_params=pltpu.CompilerParams(vmem_limit_bytes=32 * 1024 * 1024),
    )(*args)


# ----------------------------- parameter setup ------------------------------

def init_params(key):
    """Parameters in the 'torch-equivalent' layout (Linear weights pre-transposed)."""
    def dense(k, fan_in, fan_out):
        return (jax.random.normal(k, (fan_in, fan_out), jnp.float32)
                / np.sqrt(fan_in)).astype(jnp.float32)

    keys = jax.random.split(key, 4 + DEPTH)
    params = {
        'pos_emb': jax.random.normal(keys[0], (SEQ, EMB), jnp.float32),
        'wc': dense(keys[1], EMB, NUM_CLASSES),
        'bc': 0.01 * jax.random.normal(keys[2], (1, NUM_CLASSES), jnp.float32),
        'blocks': [],
    }
    for d in range(DEPTH):
        bk = jax.random.split(keys[4 + d], 8)
        params['blocks'].append({
            'wq': dense(bk[0], EMB, HEADS * EMB),
            'wk': dense(bk[1], EMB, HEADS * EMB),
            'wv': dense(bk[2], EMB, HEADS * EMB),
            'wu': dense(bk[3], HEADS * EMB, EMB),
            'bu': 0.01 * jax.random.normal(bk[4], (1, EMB), jnp.float32),
            'g1': jnp.ones((1, EMB), jnp.float32),
            'beta1': jnp.zeros((1, EMB), jnp.float32),
            'w1': dense(bk[5], EMB, FF_MULT * EMB),
            'bf1': 0.01 * jax.random.normal(bk[6], (1, FF_MULT * EMB), jnp.float32),
            'w2': dense(bk[7], FF_MULT * EMB, EMB),
            'bf2': jnp.zeros((1, EMB), jnp.float32),
            'g2': jnp.ones((1, EMB), jnp.float32),
            'beta2': jnp.zeros((1, EMB), jnp.float32),
        })
    return params


def pack_params(params):
    """One-time host-side re-layout for the fused kernel:
       * fuse Q/K/V weights into one lane-dense slab [DEPTH, EMB, 3*HEADS*EMB]
         (columns: [q | k | v], each head-major) with the e**-0.25 scale folded
         into the q/k columns,
       * keep unify / FFN / classifier weights as lane-dense [in, out] slabs
         stacked on a leading DEPTH axis,
       * store all MXU weight operands in bf16; biases / LN params stay f32."""
    scale = float(EMB) ** -0.25
    blks = params['blocks']

    def bf16(w):
        return w.astype(jnp.bfloat16)

    wqkv = jnp.stack([jnp.concatenate([p['wq'] * scale, p['wk'] * scale, p['wv']],
                                      axis=-1) for p in blks])          # (D, E, 3*H*E)
    return {
        'pos_emb': params['pos_emb'],
        'wqkv': bf16(wqkv),
        'wu': bf16(jnp.stack([p['wu'] for p in blks])),
        'bu': jnp.stack([p['bu'] for p in blks]),
        'g1': jnp.stack([p['g1'] for p in blks]),
        'beta1': jnp.stack([p['beta1'] for p in blks]),
        'w1': bf16(jnp.stack([p['w1'] for p in blks])),
        'bf1': jnp.stack([p['bf1'] for p in blks]),
        'w2': bf16(jnp.stack([p['w2'] for p in blks])),
        'bf2': jnp.stack([p['bf2'] for p in blks]),
        'g2': jnp.stack([p['g2'] for p in blks]),
        'beta2': jnp.stack([p['beta2'] for p in blks]),
        'wc': bf16(params['wc']),
        'bc': params['bc'],
    }


# --------------------------- pure-JAX reference -----------------------------

def _layernorm(x, g, b):
    mu = jnp.mean(x, axis=-1, keepdims=True)
    var = jnp.mean((x - mu) ** 2, axis=-1, keepdims=True)
    return (x - mu) * jax.lax.rsqrt(var + LN_EPS) * g + b


def _block_ref(x, p):
    b, t, e = x.shape
    scale = float(e) ** -0.25

    def split_heads(y):
        return y.reshape(b, t, HEADS, e).transpose(0, 2, 1, 3)

    q = split_heads(x @ p['wq']) * scale
    k = split_heads(x @ p['wk']) * scale
    v = split_heads(x @ p['wv'])
    dot = jax.nn.softmax(jnp.einsum('bhqe,bhke->bhqk', q, k), axis=-1)
    out = jnp.einsum('bhqk,bhke->bhqe', dot, v).transpose(0, 2, 1, 3).reshape(b, t, HEADS * e)
    attended = out @ p['wu'] + p['bu'][0]
    y = _layernorm(attended + x, p['g1'][0], p['beta1'][0])
    ff = jnp.maximum(y @ p['w1'] + p['bf1'][0], 0.0) @ p['w2'] + p['bf2'][0]
    return _layernorm(ff + y, p['g2'][0], p['beta2'][0])


def reference_forward(x, params):
    b, t, e = x.shape
    h = x + params['pos_emb'][None, :t, :]
    for blk in params['blocks']:
        h = _block_ref(h, blk)
    pooled = jnp.max(h, axis=1)
    logits = pooled @ params['wc'] + params['bc'][0]
    return jax.nn.log_softmax(logits, axis=-1)


# ----------------------------------- main ------------------------------------

if __name__ == "__main__":
    key = jax.random.PRNGKey(0)
    k_x, k_p = jax.random.split(key)
    # CTransformer.forward receives a dense (b, t, e) tensor (it unpacks three dims).
    x = jax.random.normal(k_x, (BATCH, SEQ, EMB), jnp.float32)
    params = init_params(k_p)
    kernel_params = pack_params(params)     # one-time weight re-layout (host side)

    out = jax.block_until_ready(ctransformer_forward(x, kernel_params))

    ref = jax.block_until_ready(reference_forward(x, params))
    # Tolerance covers bf16 MXU operands (f32 accumulation) vs the pure-f32 reference.
    np.testing.assert_allclose(np.asarray(out), np.asarray(ref), rtol=5e-2, atol=5e-2)
    assert out.shape == (BATCH, NUM_CLASSES)

    print("KERNEL_OK")
</pallas_src>

<mosaic_0001>
module attributes {stable_mosaic.version = 11 : i64} {
  func.func @_ctransformer_kernel(%arg0: memref<2x8x32xf32, #tpu.memory_space<vmem>>, %arg1: memref<8x32xf32, #tpu.memory_space<vmem>>, %arg2: memref<2x32x384xbf16, #tpu.memory_space<vmem>>, %arg3: memref<2x128x32xbf16, #tpu.memory_space<vmem>>, %arg4: memref<2x1x32xf32, #tpu.memory_space<vmem>>, %arg5: memref<2x1x32xf32, #tpu.memory_space<vmem>>, %arg6: memref<2x1x32xf32, #tpu.memory_space<vmem>>, %arg7: memref<2x32x128xbf16, #tpu.memory_space<vmem>>, %arg8: memref<2x1x128xf32, #tpu.memory_space<vmem>>, %arg9: memref<2x128x32xbf16, #tpu.memory_space<vmem>>, %arg10: memref<2x1x32xf32, #tpu.memory_space<vmem>>, %arg11: memref<2x1x32xf32, #tpu.memory_space<vmem>>, %arg12: memref<2x1x32xf32, #tpu.memory_space<vmem>>, %arg13: memref<32x10xbf16, #tpu.memory_space<vmem>>, %arg14: memref<1x10xf32, #tpu.memory_space<vmem>>, %arg15: memref<2x10xf32, #tpu.memory_space<vmem>>) attributes {dimension_semantics = [], scalar_prefetch = 0 : i64, scratch_operands = 0 : i64, tpu.core_type = #tpu.core_type<tc>} {
    %c0 = arith.constant 0 : index
    %c0_0 = arith.constant 0 : index
    %c0_1 = arith.constant 0 : index
    %0 = vector.load %arg0[%c0, %c0_0, %c0_1] : memref<2x8x32xf32, #tpu.memory_space<vmem>>, vector<2x8x32xf32>
    %c0_2 = arith.constant 0 : index
    %c0_3 = arith.constant 0 : index
    %1 = vector.load %arg1[%c0_2, %c0_3] : memref<8x32xf32, #tpu.memory_space<vmem>>, vector<8x32xf32>
    %2 = vector.shape_cast %1 : vector<8x32xf32> to vector<1x8x32xf32>
    %3 = vector.broadcast %2 : vector<1x8x32xf32> to vector<2x8x32xf32>
    %4 = arith.addf %0, %3 : vector<2x8x32xf32>
    %5 = vector.shape_cast %4 : vector<2x8x32xf32> to vector<16x32xf32>
    %c0_4 = arith.constant 0 : index
    %c0_5 = arith.constant 0 : index
    %c0_6 = arith.constant 0 : index
    %6 = vector.load %arg2[%c0_4, %c0_5, %c0_6] : memref<2x32x384xbf16, #tpu.memory_space<vmem>>, vector<1x32x384xbf16>
    %7 = vector.shape_cast %6 : vector<1x32x384xbf16> to vector<32x384xbf16>
    %c0_7 = arith.constant 0 : index
    %c0_8 = arith.constant 0 : index
    %c0_9 = arith.constant 0 : index
    %8 = vector.load %arg3[%c0_7, %c0_8, %c0_9] : memref<2x128x32xbf16, #tpu.memory_space<vmem>>, vector<1x128x32xbf16>
    %9 = vector.shape_cast %8 : vector<1x128x32xbf16> to vector<128x32xbf16>
    %c0_10 = arith.constant 0 : index
    %c0_11 = arith.constant 0 : index
    %c0_12 = arith.constant 0 : index
    %10 = vector.load %arg4[%c0_10, %c0_11, %c0_12] : memref<2x1x32xf32, #tpu.memory_space<vmem>>, vector<1x1x32xf32>
    %11 = vector.shape_cast %10 : vector<1x1x32xf32> to vector<1x32xf32>
    %c0_13 = arith.constant 0 : index
    %c0_14 = arith.constant 0 : index
    %c0_15 = arith.constant 0 : index
    %12 = vector.load %arg5[%c0_13, %c0_14, %c0_15] : memref<2x1x32xf32, #tpu.memory_space<vmem>>, vector<1x1x32xf32>
    %13 = vector.shape_cast %12 : vector<1x1x32xf32> to vector<1x32xf32>
    %c0_16 = arith.constant 0 : index
    %c0_17 = arith.constant 0 : index
    %c0_18 = arith.constant 0 : index
    %14 = vector.load %arg6[%c0_16, %c0_17, %c0_18] : memref<2x1x32xf32, #tpu.memory_space<vmem>>, vector<1x1x32xf32>
    %15 = vector.shape_cast %14 : vector<1x1x32xf32> to vector<1x32xf32>
    %c0_19 = arith.constant 0 : index
    %c0_20 = arith.constant 0 : index
    %c0_21 = arith.constant 0 : index
    %16 = vector.load %arg7[%c0_19, %c0_20, %c0_21] : memref<2x32x128xbf16, #tpu.memory_space<vmem>>, vector<1x32x128xbf16>
    %17 = vector.shape_cast %16 : vector<1x32x128xbf16> to vector<32x128xbf16>
    %c0_22 = arith.constant 0 : index
    %c0_23 = arith.constant 0 : index
    %c0_24 = arith.constant 0 : index
    %18 = vector.load %arg8[%c0_22, %c0_23, %c0_24] : memref<2x1x128xf32, #tpu.memory_space<vmem>>, vector<1x1x128xf32>
    %19 = vector.shape_cast %18 : vector<1x1x128xf32> to vector<1x128xf32>
    %c0_25 = arith.constant 0 : index
    %c0_26 = arith.constant 0 : index
    %c0_27 = arith.constant 0 : index
    %20 = vector.load %arg9[%c0_25, %c0_26, %c0_27] : memref<2x128x32xbf16, #tpu.memory_space<vmem>>, vector<1x128x32xbf16>
    %21 = vector.shape_cast %20 : vector<1x128x32xbf16> to vector<128x32xbf16>
    %c0_28 = arith.constant 0 : index
    %c0_29 = arith.constant 0 : index
    %c0_30 = arith.constant 0 : index
    %22 = vector.load %arg10[%c0_28, %c0_29, %c0_30] : memref<2x1x32xf32, #tpu.memory_space<vmem>>, vector<1x1x32xf32>
    %23 = vector.shape_cast %22 : vector<1x1x32xf32> to vector<1x32xf32>
    %c0_31 = arith.constant 0 : index
    %c0_32 = arith.constant 0 : index
    %c0_33 = arith.constant 0 : index
    %24 = vector.load %arg11[%c0_31, %c0_32, %c0_33] : memref<2x1x32xf32, #tpu.memory_space<vmem>>, vector<1x1x32xf32>
    %25 = vector.shape_cast %24 : vector<1x1x32xf32> to vector<1x32xf32>
    %c0_34 = arith.constant 0 : index
    %c0_35 = arith.constant 0 : index
    %c0_36 = arith.constant 0 : index
    %26 = vector.load %arg12[%c0_34, %c0_35, %c0_36] : memref<2x1x32xf32, #tpu.memory_space<vmem>>, vector<1x1x32xf32>
    %27 = vector.shape_cast %26 : vector<1x1x32xf32> to vector<1x32xf32>
    %28 = arith.truncf %5 : vector<16x32xf32> to vector<16x32xbf16>
    %cst = arith.constant dense<0.000000e+00> : vector<16x384xf32>
    %29 = tpu.matmul %28, %7, %cst {dimension_numbers = #tpu.dot_dimension_numbers<[1], [0], [0], [1], [0, 0, 1, 1], [], []>} : vector<16x32xbf16>, vector<32x384xbf16>, vector<16x384xf32> -> vector<16x384xf32>
    %30 = vector.extract_strided_slice %29 {offsets = [0, 0], sizes = [16, 32], strides = [1, 1]} : vector<16x384xf32> to vector<16x32xf32>
    %31 = vector.shape_cast %30 : vector<16x32xf32> to vector<2x8x32xf32>
    %32 = vector.extract_strided_slice %29 {offsets = [0, 128], sizes = [16, 32], strides = [1, 1]} : vector<16x384xf32> to vector<16x32xf32>
    %33 = vector.shape_cast %32 : vector<16x32xf32> to vector<2x8x32xf32>
    %34 = vector.extract_strided_slice %29 {offsets = [0, 256], sizes = [16, 32], strides = [1, 1]} : vector<16x384xf32> to vector<16x32xf32>
    %35 = vector.shape_cast %34 : vector<16x32xf32> to vector<2x8x32xf32>
    "tpu.trace_start"() <{level = 10 : i32, message = "bqe,bke->bqk"}> : () -> ()
    %cst_37 = arith.constant dense<0.000000e+00> : vector<2x8x8xf32>
    %36 = tpu.matmul %31, %33, %cst_37 {dimension_numbers = #tpu.dot_dimension_numbers<[2], [2], [1], [1], [0, 0, 0, 1, 1, 1], [0], [0]>} : vector<2x8x32xf32>, vector<2x8x32xf32>, vector<2x8x8xf32> -> vector<2x8x8xf32>
    "tpu.trace_stop"() : () -> ()
    %cst_38 = arith.constant dense<0xFF800000> : vector<2x8xf32>
    %37 = vector.multi_reduction <maximumf>, %36, %cst_38 [2] : vector<2x8x8xf32> to vector<2x8xf32>
    %38 = vector.shape_cast %37 : vector<2x8xf32> to vector<2x8x1xf32>
    %39 = vector.broadcast %38 : vector<2x8x1xf32> to vector<2x8x8xf32>
    %40 = arith.subf %36, %39 : vector<2x8x8xf32>
    %41 = math.exp %40 : vector<2x8x8xf32>
    %cst_39 = arith.constant dense<0.000000e+00> : vector<2x8xf32>
    %42 = vector.multi_reduction <add>, %41, %cst_39 [2] : vector<2x8x8xf32> to vector<2x8xf32>
    %43 = vector.shape_cast %42 : vector<2x8xf32> to vector<2x8x1xf32>
    %44 = vector.broadcast %43 : vector<2x8x1xf32> to vector<2x8x8xf32>
    %45 = arith.divf %41, %44 : vector<2x8x8xf32>
    "tpu.trace_start"() <{level = 10 : i32, message = "bqk,bke->bqe"}> : () -> ()
    %cst_40 = arith.constant dense<0.000000e+00> : vector<2x8x32xf32>
    %46 = tpu.matmul %45, %35, %cst_40 {dimension_numbers = #tpu.dot_dimension_numbers<[2], [1], [1], [2], [0, 0, 0, 1, 1, 2], [0], [0]>} : vector<2x8x8xf32>, vector<2x8x32xf32>, vector<2x8x32xf32> -> vector<2x8x32xf32>
    "tpu.trace_stop"() : () -> ()
    %47 = vector.extract_strided_slice %29 {offsets = [0, 32], sizes = [16, 32], strides = [1, 1]} : vector<16x384xf32> to vector<16x32xf32>
    %48 = vector.shape_cast %47 : vector<16x32xf32> to vector<2x8x32xf32>
    %49 = vector.extract_strided_slice %29 {offsets = [0, 160], sizes = [16, 32], strides = [1, 1]} : vector<16x384xf32> to vector<16x32xf32>
    %50 = vector.shape_cast %49 : vector<16x32xf32> to vector<2x8x32xf32>
    %51 = vector.extract_strided_slice %29 {offsets = [0, 288], sizes = [16, 32], strides = [1, 1]} : vector<16x384xf32> to vector<16x32xf32>
    %52 = vector.shape_cast %51 : vector<16x32xf32> to vector<2x8x32xf32>
    "tpu.trace_start"() <{level = 10 : i32, message = "bqe,bke->bqk"}> : () -> ()
    %cst_41 = arith.constant dense<0.000000e+00> : vector<2x8x8xf32>
    %53 = tpu.matmul %48, %50, %cst_41 {dimension_numbers = #tpu.dot_dimension_numbers<[2], [2], [1], [1], [0, 0, 0, 1, 1, 1], [0], [0]>} : vector<2x8x32xf32>, vector<2x8x32xf32>, vector<2x8x8xf32> -> vector<2x8x8xf32>
    "tpu.trace_stop"() : () -> ()
    %cst_42 = arith.constant dense<0xFF800000> : vector<2x8xf32>
    %54 = vector.multi_reduction <maximumf>, %53, %cst_42 [2] : vector<2x8x8xf32> to vector<2x8xf32>
    %55 = vector.shape_cast %54 : vector<2x8xf32> to vector<2x8x1xf32>
    %56 = vector.broadcast %55 : vector<2x8x1xf32> to vector<2x8x8xf32>
    %57 = arith.subf %53, %56 : vector<2x8x8xf32>
    %58 = math.exp %57 : vector<2x8x8xf32>
    %cst_43 = arith.constant dense<0.000000e+00> : vector<2x8xf32>
    %59 = vector.multi_reduction <add>, %58, %cst_43 [2] : vector<2x8x8xf32> to vector<2x8xf32>
    %60 = vector.shape_cast %59 : vector<2x8xf32> to vector<2x8x1xf32>
    %61 = vector.broadcast %60 : vector<2x8x1xf32> to vector<2x8x8xf32>
    %62 = arith.divf %58, %61 : vector<2x8x8xf32>
    "tpu.trace_start"() <{level = 10 : i32, message = "bqk,bke->bqe"}> : () -> ()
    %cst_44 = arith.constant dense<0.000000e+00> : vector<2x8x32xf32>
    %63 = tpu.matmul %62, %52, %cst_44 {dimension_numbers = #tpu.dot_dimension_numbers<[2], [1], [1], [2], [0, 0, 0, 1, 1, 2], [0], [0]>} : vector<2x8x8xf32>, vector<2x8x32xf32>, vector<2x8x32xf32> -> vector<2x8x32xf32>
    "tpu.trace_stop"() : () -> ()
    %64 = vector.extract_strided_slice %29 {offsets = [0, 64], sizes = [16, 32], strides = [1, 1]} : vector<16x384xf32> to vector<16x32xf32>
    %65 = vector.shape_cast %64 : vector<16x32xf32> to vector<2x8x32xf32>
    %66 = vector.extract_strided_slice %29 {offsets = [0, 192], sizes = [16, 32], strides = [1, 1]} : vector<16x384xf32> to vector<16x32xf32>
    %67 = vector.shape_cast %66 : vector<16x32xf32> to vector<2x8x32xf32>
    %68 = vector.extract_strided_slice %29 {offsets = [0, 320], sizes = [16, 32], strides = [1, 1]} : vector<16x384xf32> to vector<16x32xf32>
    %69 = vector.shape_cast %68 : vector<16x32xf32> to vector<2x8x32xf32>
    "tpu.trace_start"() <{level = 10 : i32, message = "bqe,bke->bqk"}> : () -> ()
    %cst_45 = arith.constant dense<0.000000e+00> : vector<2x8x8xf32>
    %70 = tpu.matmul %65, %67, %cst_45 {dimension_numbers = #tpu.dot_dimension_numbers<[2], [2], [1], [1], [0, 0, 0, 1, 1, 1], [0], [0]>} : vector<2x8x32xf32>, vector<2x8x32xf32>, vector<2x8x8xf32> -> vector<2x8x8xf32>
    "tpu.trace_stop"() : () -> ()
    %cst_46 = arith.constant dense<0xFF800000> : vector<2x8xf32>
    %71 = vector.multi_reduction <maximumf>, %70, %cst_46 [2] : vector<2x8x8xf32> to vector<2x8xf32>
    %72 = vector.shape_cast %71 : vector<2x8xf32> to vector<2x8x1xf32>
    %73 = vector.broadcast %72 : vector<2x8x1xf32> to vector<2x8x8xf32>
    %74 = arith.subf %70, %73 : vector<2x8x8xf32>
    %75 = math.exp %74 : vector<2x8x8xf32>
    %cst_47 = arith.constant dense<0.000000e+00> : vector<2x8xf32>
    %76 = vector.multi_reduction <add>, %75, %cst_47 [2] : vector<2x8x8xf32> to vector<2x8xf32>
    %77 = vector.shape_cast %76 : vector<2x8xf32> to vector<2x8x1xf32>
    %78 = vector.broadcast %77 : vector<2x8x1xf32> to vector<2x8x8xf32>
    %79 = arith.divf %75, %78 : vector<2x8x8xf32>
    "tpu.trace_start"() <{level = 10 : i32, message = "bqk,bke->bqe"}> : () -> ()
    %cst_48 = arith.constant dense<0.000000e+00> : vector<2x8x32xf32>
    %80 = tpu.matmul %79, %69, %cst_48 {dimension_numbers = #tpu.dot_dimension_numbers<[2], [1], [1], [2], [0, 0, 0, 1, 1, 2], [0], [0]>} : vector<2x8x8xf32>, vector<2x8x32xf32>, vector<2x8x32xf32> -> vector<2x8x32xf32>
    "tpu.trace_stop"() : () -> ()
    %81 = vector.extract_strided_slice %29 {offsets = [0, 96], sizes = [16, 32], strides = [1, 1]} : vector<16x384xf32> to vector<16x32xf32>
    %82 = vector.shape_cast %81 : vector<16x32xf32> to vector<2x8x32xf32>
    %83 = vector.extract_strided_slice %29 {offsets = [0, 224], sizes = [16, 32], strides = [1, 1]} : vector<16x384xf32> to vector<16x32xf32>
    %84 = vector.shape_cast %83 : vector<16x32xf32> to vector<2x8x32xf32>
    %85 = vector.extract_strided_slice %29 {offsets = [0, 352], sizes = [16, 32], strides = [1, 1]} : vector<16x384xf32> to vector<16x32xf32>
    %86 = vector.shape_cast %85 : vector<16x32xf32> to vector<2x8x32xf32>
    "tpu.trace_start"() <{level = 10 : i32, message = "bqe,bke->bqk"}> : () -> ()
    %cst_49 = arith.constant dense<0.000000e+00> : vector<2x8x8xf32>
    %87 = tpu.matmul %82, %84, %cst_49 {dimension_numbers = #tpu.dot_dimension_numbers<[2], [2], [1], [1], [0, 0, 0, 1, 1, 1], [0], [0]>} : vector<2x8x32xf32>, vector<2x8x32xf32>, vector<2x8x8xf32> -> vector<2x8x8xf32>
    "tpu.trace_stop"() : () -> ()
    %cst_50 = arith.constant dense<0xFF800000> : vector<2x8xf32>
    %88 = vector.multi_reduction <maximumf>, %87, %cst_50 [2] : vector<2x8x8xf32> to vector<2x8xf32>
    %89 = vector.shape_cast %88 : vector<2x8xf32> to vector<2x8x1xf32>
    %90 = vector.broadcast %89 : vector<2x8x1xf32> to vector<2x8x8xf32>
    %91 = arith.subf %87, %90 : vector<2x8x8xf32>
    %92 = math.exp %91 : vector<2x8x8xf32>
    %cst_51 = arith.constant dense<0.000000e+00> : vector<2x8xf32>
    %93 = vector.multi_reduction <add>, %92, %cst_51 [2] : vector<2x8x8xf32> to vector<2x8xf32>
    %94 = vector.shape_cast %93 : vector<2x8xf32> to vector<2x8x1xf32>
    %95 = vector.broadcast %94 : vector<2x8x1xf32> to vector<2x8x8xf32>
    %96 = arith.divf %92, %95 : vector<2x8x8xf32>
    "tpu.trace_start"() <{level = 10 : i32, message = "bqk,bke->bqe"}> : () -> ()
    %cst_52 = arith.constant dense<0.000000e+00> : vector<2x8x32xf32>
    %97 = tpu.matmul %96, %86, %cst_52 {dimension_numbers = #tpu.dot_dimension_numbers<[2], [1], [1], [2], [0, 0, 0, 1, 1, 2], [0], [0]>} : vector<2x8x8xf32>, vector<2x8x32xf32>, vector<2x8x32xf32> -> vector<2x8x32xf32>
    "tpu.trace_stop"() : () -> ()
    %98 = tpu.concatenate %46, %63, %80, %97 in 2 : vector<2x8x32xf32>, vector<2x8x32xf32>, vector<2x8x32xf32>, vector<2x8x32xf32> -> vector<2x8x128xf32>
    %99 = vector.shape_cast %98 : vector<2x8x128xf32> to vector<16x128xf32>
    %100 = arith.truncf %99 : vector<16x128xf32> to vector<16x128xbf16>
    %cst_53 = arith.constant dense<0.000000e+00> : vector<16x32xf32>
    %101 = tpu.matmul %100, %9, %cst_53 {dimension_numbers = #tpu.dot_dimension_numbers<[1], [0], [0], [1], [0, 0, 1, 1], [], []>} : vector<16x128xbf16>, vector<128x32xbf16>, vector<16x32xf32> -> vector<16x32xf32>
    %102 = vector.broadcast %11 : vector<1x32xf32> to vector<16x32xf32>
    %103 = arith.addf %101, %102 : vector<16x32xf32>
    %104 = arith.addf %103, %5 : vector<16x32xf32>
    %cst_54 = arith.constant dense<0.000000e+00> : vector<16xf32>
    %105 = vector.multi_reduction <add>, %104, %cst_54 [1] : vector<16x32xf32> to vector<16xf32>
    %106 = vector.shape_cast %105 : vector<16xf32> to vector<16x1xf32>
    %cst_55 = arith.constant 3.200000e+01 : f32
    %107 = vector.broadcast %cst_55 : f32 to vector<16x1xf32>
    %108 = arith.divf %106, %107 : vector<16x1xf32>
    %109 = vector.broadcast %108 : vector<16x1xf32> to vector<16x32xf32>
    %110 = arith.subf %104, %109 : vector<16x32xf32>
    %111 = arith.mulf %110, %110 : vector<16x32xf32>
    %cst_56 = arith.constant dense<0.000000e+00> : vector<16xf32>
    %112 = vector.multi_reduction <add>, %111, %cst_56 [1] : vector<16x32xf32> to vector<16xf32>
    %113 = vector.shape_cast %112 : vector<16xf32> to vector<16x1xf32>
    %cst_57 = arith.constant 3.200000e+01 : f32
    %114 = vector.broadcast %cst_57 : f32 to vector<16x1xf32>
    %115 = arith.divf %113, %114 : vector<16x1xf32>
    %116 = vector.broadcast %108 : vector<16x1xf32> to vector<16x32xf32>
    %117 = arith.subf %104, %116 : vector<16x32xf32>
    %cst_58 = arith.constant 9.99999974E-6 : f32
    %118 = vector.broadcast %cst_58 : f32 to vector<16x1xf32>
    %119 = arith.addf %115, %118 : vector<16x1xf32>
    %120 = math.rsqrt %119 : vector<16x1xf32>
    %121 = vector.broadcast %120 : vector<16x1xf32> to vector<16x32xf32>
    %122 = arith.mulf %117, %121 : vector<16x32xf32>
    %123 = vector.broadcast %13 : vector<1x32xf32> to vector<16x32xf32>
    %124 = arith.mulf %122, %123 : vector<16x32xf32>
    %125 = vector.broadcast %15 : vector<1x32xf32> to vector<16x32xf32>
    %126 = arith.addf %124, %125 : vector<16x32xf32>
    %127 = arith.truncf %126 : vector<16x32xf32> to vector<16x32xbf16>
    %cst_59 = arith.constant dense<0.000000e+00> : vector<16x128xf32>
    %128 = tpu.matmul %127, %17, %cst_59 {dimension_numbers = #tpu.dot_dimension_numbers<[1], [0], [0], [1], [0, 0, 1, 1], [], []>} : vector<16x32xbf16>, vector<32x128xbf16>, vector<16x128xf32> -> vector<16x128xf32>
    %129 = vector.broadcast %19 : vector<1x128xf32> to vector<16x128xf32>
    %130 = arith.addf %128, %129 : vector<16x128xf32>
    %cst_60 = arith.constant 0.000000e+00 : f32
    %131 = vector.broadcast %cst_60 : f32 to vector<16x128xf32>
    %132 = arith.maximumf %130, %131 : vector<16x128xf32>
    %133 = arith.truncf %132 : vector<16x128xf32> to vector<16x128xbf16>
    %cst_61 = arith.constant dense<0.000000e+00> : vector<16x32xf32>
    %134 = tpu.matmul %133, %21, %cst_61 {dimension_numbers = #tpu.dot_dimension_numbers<[1], [0], [0], [1], [0, 0, 1, 1], [], []>} : vector<16x128xbf16>, vector<128x32xbf16>, vector<16x32xf32> -> vector<16x32xf32>
    %135 = vector.broadcast %23 : vector<1x32xf32> to vector<16x32xf32>
    %136 = arith.addf %134, %135 : vector<16x32xf32>
    %137 = arith.addf %136, %126 : vector<16x32xf32>
    %cst_62 = arith.constant dense<0.000000e+00> : vector<16xf32>
    %138 = vector.multi_reduction <add>, %137, %cst_62 [1] : vector<16x32xf32> to vector<16xf32>
    %139 = vector.shape_cast %138 : vector<16xf32> to vector<16x1xf32>
    %cst_63 = arith.constant 3.200000e+01 : f32
    %140 = vector.broadcast %cst_63 : f32 to vector<16x1xf32>
    %141 = arith.divf %139, %140 : vector<16x1xf32>
    %142 = vector.broadcast %141 : vector<16x1xf32> to vector<16x32xf32>
    %143 = arith.subf %137, %142 : vector<16x32xf32>
    %144 = arith.mulf %143, %143 : vector<16x32xf32>
    %cst_64 = arith.constant dense<0.000000e+00> : vector<16xf32>
    %145 = vector.multi_reduction <add>, %144, %cst_64 [1] : vector<16x32xf32> to vector<16xf32>
    %146 = vector.shape_cast %145 : vector<16xf32> to vector<16x1xf32>
    %cst_65 = arith.constant 3.200000e+01 : f32
    %147 = vector.broadcast %cst_65 : f32 to vector<16x1xf32>
    %148 = arith.divf %146, %147 : vector<16x1xf32>
    %149 = vector.broadcast %141 : vector<16x1xf32> to vector<16x32xf32>
    %150 = arith.subf %137, %149 : vector<16x32xf32>
    %cst_66 = arith.constant 9.99999974E-6 : f32
    %151 = vector.broadcast %cst_66 : f32 to vector<16x1xf32>
    %152 = arith.addf %148, %151 : vector<16x1xf32>
    %153 = math.rsqrt %152 : vector<16x1xf32>
    %154 = vector.broadcast %153 : vector<16x1xf32> to vector<16x32xf32>
    %155 = arith.mulf %150, %154 : vector<16x32xf32>
    %156 = vector.broadcast %25 : vector<1x32xf32> to vector<16x32xf32>
    %157 = arith.mulf %155, %156 : vector<16x32xf32>
    %158 = vector.broadcast %27 : vector<1x32xf32> to vector<16x32xf32>
    %159 = arith.addf %157, %158 : vector<16x32xf32>
    %c1 = arith.constant 1 : index
    %c0_67 = arith.constant 0 : index
    %c0_68 = arith.constant 0 : index
    %160 = vector.load %arg2[%c1, %c0_67, %c0_68] : memref<2x32x384xbf16, #tpu.memory_space<vmem>>, vector<1x32x384xbf16>
    %161 = vector.shape_cast %160 : vector<1x32x384xbf16> to vector<32x384xbf16>
    %c1_69 = arith.constant 1 : index
    %c0_70 = arith.constant 0 : index
    %c0_71 = arith.constant 0 : index
    %162 = vector.load %arg3[%c1_69, %c0_70, %c0_71] : memref<2x128x32xbf16, #tpu.memory_space<vmem>>, vector<1x128x32xbf16>
    %163 = vector.shape_cast %162 : vector<1x128x32xbf16> to vector<128x32xbf16>
    %c1_72 = arith.constant 1 : index
    %c0_73 = arith.constant 0 : index
    %c0_74 = arith.constant 0 : index
    %164 = vector.load %arg4[%c1_72, %c0_73, %c0_74] : memref<2x1x32xf32, #tpu.memory_space<vmem>>, vector<1x1x32xf32>
    %165 = vector.shape_cast %164 : vector<1x1x32xf32> to vector<1x32xf32>
    %c1_75 = arith.constant 1 : index
    %c0_76 = arith.constant 0 : index
    %c0_77 = arith.constant 0 : index
    %166 = vector.load %arg5[%c1_75, %c0_76, %c0_77] : memref<2x1x32xf32, #tpu.memory_space<vmem>>, vector<1x1x32xf32>
    %167 = vector.shape_cast %166 : vector<1x1x32xf32> to vector<1x32xf32>
    %c1_78 = arith.constant 1 : index
    %c0_79 = arith.constant 0 : index
    %c0_80 = arith.constant 0 : index
    %168 = vector.load %arg6[%c1_78, %c0_79, %c0_80] : memref<2x1x32xf32, #tpu.memory_space<vmem>>, vector<1x1x32xf32>
    %169 = vector.shape_cast %168 : vector<1x1x32xf32> to vector<1x32xf32>
    %c1_81 = arith.constant 1 : index
    %c0_82 = arith.constant 0 : index
    %c0_83 = arith.constant 0 : index
    %170 = vector.load %arg7[%c1_81, %c0_82, %c0_83] : memref<2x32x128xbf16, #tpu.memory_space<vmem>>, vector<1x32x128xbf16>
    %171 = vector.shape_cast %170 : vector<1x32x128xbf16> to vector<32x128xbf16>
    %c1_84 = arith.constant 1 : index
    %c0_85 = arith.constant 0 : index
    %c0_86 = arith.constant 0 : index
    %172 = vector.load %arg8[%c1_84, %c0_85, %c0_86] : memref<2x1x128xf32, #tpu.memory_space<vmem>>, vector<1x1x128xf32>
    %173 = vector.shape_cast %172 : vector<1x1x128xf32> to vector<1x128xf32>
    %c1_87 = arith.constant 1 : index
    %c0_88 = arith.constant 0 : index
    %c0_89 = arith.constant 0 : index
    %174 = vector.load %arg9[%c1_87, %c0_88, %c0_89] : memref<2x128x32xbf16, #tpu.memory_space<vmem>>, vector<1x128x32xbf16>
    %175 = vector.shape_cast %174 : vector<1x128x32xbf16> to vector<128x32xbf16>
    %c1_90 = arith.constant 1 : index
    %c0_91 = arith.constant 0 : index
    %c0_92 = arith.constant 0 : index
    %176 = vector.load %arg10[%c1_90, %c0_91, %c0_92] : memref<2x1x32xf32, #tpu.memory_space<vmem>>, vector<1x1x32xf32>
    %177 = vector.shape_cast %176 : vector<1x1x32xf32> to vector<1x32xf32>
    %c1_93 = arith.constant 1 : index
    %c0_94 = arith.constant 0 : index
    %c0_95 = arith.constant 0 : index
    %178 = vector.load %arg11[%c1_93, %c0_94, %c0_95] : memref<2x1x32xf32, #tpu.memory_space<vmem>>, vector<1x1x32xf32>
    %179 = vector.shape_cast %178 : vector<1x1x32xf32> to vector<1x32xf32>
    %c1_96 = arith.constant 1 : index
    %c0_97 = arith.constant 0 : index
    %c0_98 = arith.constant 0 : index
    %180 = vector.load %arg12[%c1_96, %c0_97, %c0_98] : memref<2x1x32xf32, #tpu.memory_space<vmem>>, vector<1x1x32xf32>
    %181 = vector.shape_cast %180 : vector<1x1x32xf32> to vector<1x32xf32>
    %182 = arith.truncf %159 : vector<16x32xf32> to vector<16x32xbf16>
    %cst_99 = arith.constant dense<0.000000e+00> : vector<16x384xf32>
    %183 = tpu.matmul %182, %161, %cst_99 {dimension_numbers = #tpu.dot_dimension_numbers<[1], [0], [0], [1], [0, 0, 1, 1], [], []>} : vector<16x32xbf16>, vector<32x384xbf16>, vector<16x384xf32> -> vector<16x384xf32>
    %184 = vector.extract_strided_slice %183 {offsets = [0, 0], sizes = [16, 32], strides = [1, 1]} : vector<16x384xf32> to vector<16x32xf32>
    %185 = vector.shape_cast %184 : vector<16x32xf32> to vector<2x8x32xf32>
    %186 = vector.extract_strided_slice %183 {offsets = [0, 128], sizes = [16, 32], strides = [1, 1]} : vector<16x384xf32> to vector<16x32xf32>
    %187 = vector.shape_cast %186 : vector<16x32xf32> to vector<2x8x32xf32>
    %188 = vector.extract_strided_slice %183 {offsets = [0, 256], sizes = [16, 32], strides = [1, 1]} : vector<16x384xf32> to vector<16x32xf32>
    %189 = vector.shape_cast %188 : vector<16x32xf32> to vector<2x8x32xf32>
    "tpu.trace_start"() <{level = 10 : i32, message = "bqe,bke->bqk"}> : () -> ()
    %cst_100 = arith.constant dense<0.000000e+00> : vector<2x8x8xf32>
    %190 = tpu.matmul %185, %187, %cst_100 {dimension_numbers = #tpu.dot_dimension_numbers<[2], [2], [1], [1], [0, 0, 0, 1, 1, 1], [0], [0]>} : vector<2x8x32xf32>, vector<2x8x32xf32>, vector<2x8x8xf32> -> vector<2x8x8xf32>
    "tpu.trace_stop"() : () -> ()
    %cst_101 = arith.constant dense<0xFF800000> : vector<2x8xf32>
    %191 = vector.multi_reduction <maximumf>, %190, %cst_101 [2] : vector<2x8x8xf32> to vector<2x8xf32>
    %192 = vector.shape_cast %191 : vector<2x8xf32> to vector<2x8x1xf32>
    %193 = vector.broadcast %192 : vector<2x8x1xf32> to vector<2x8x8xf32>
    %194 = arith.subf %190, %193 : vector<2x8x8xf32>
    %195 = math.exp %194 : vector<2x8x8xf32>
    %cst_102 = arith.constant dense<0.000000e+00> : vector<2x8xf32>
    %196 = vector.multi_reduction <add>, %195, %cst_102 [2] : vector<2x8x8xf32> to vector<2x8xf32>
    %197 = vector.shape_cast %196 : vector<2x8xf32> to vector<2x8x1xf32>
    %198 = vector.broadcast %197 : vector<2x8x1xf32> to vector<2x8x8xf32>
    %199 = arith.divf %195, %198 : vector<2x8x8xf32>
    "tpu.trace_start"() <{level = 10 : i32, message = "bqk,bke->bqe"}> : () -> ()
    %cst_103 = arith.constant dense<0.000000e+00> : vector<2x8x32xf32>
    %200 = tpu.matmul %199, %189, %cst_103 {dimension_numbers = #tpu.dot_dimension_numbers<[2], [1], [1], [2], [0, 0, 0, 1, 1, 2], [0], [0]>} : vector<2x8x8xf32>, vector<2x8x32xf32>, vector<2x8x32xf32> -> vector<2x8x32xf32>
    "tpu.trace_stop"() : () -> ()
    %201 = vector.extract_strided_slice %183 {offsets = [0, 32], sizes = [16, 32], strides = [1, 1]} : vector<16x384xf32> to vector<16x32xf32>
    %202 = vector.shape_cast %201 : vector<16x32xf32> to vector<2x8x32xf32>
    %203 = vector.extract_strided_slice %183 {offsets = [0, 160], sizes = [16, 32], strides = [1, 1]} : vector<16x384xf32> to vector<16x32xf32>
    %204 = vector.shape_cast %203 : vector<16x32xf32> to vector<2x8x32xf32>
    %205 = vector.extract_strided_slice %183 {offsets = [0, 288], sizes = [16, 32], strides = [1, 1]} : vector<16x384xf32> to vector<16x32xf32>
    %206 = vector.shape_cast %205 : vector<16x32xf32> to vector<2x8x32xf32>
    "tpu.trace_start"() <{level = 10 : i32, message = "bqe,bke->bqk"}> : () -> ()
    %cst_104 = arith.constant dense<0.000000e+00> : vector<2x8x8xf32>
    %207 = tpu.matmul %202, %204, %cst_104 {dimension_numbers = #tpu.dot_dimension_numbers<[2], [2], [1], [1], [0, 0, 0, 1, 1, 1], [0], [0]>} : vector<2x8x32xf32>, vector<2x8x32xf32>, vector<2x8x8xf32> -> vector<2x8x8xf32>
    "tpu.trace_stop"() : () -> ()
    %cst_105 = arith.constant dense<0xFF800000> : vector<2x8xf32>
    %208 = vector.multi_reduction <maximumf>, %207, %cst_105 [2] : vector<2x8x8xf32> to vector<2x8xf32>
    %209 = vector.shape_cast %208 : vector<2x8xf32> to vector<2x8x1xf32>
    %210 = vector.broadcast %209 : vector<2x8x1xf32> to vector<2x8x8xf32>
    %211 = arith.subf %207, %210 : vector<2x8x8xf32>
    %212 = math.exp %211 : vector<2x8x8xf32>
    %cst_106 = arith.constant dense<0.000000e+00> : vector<2x8xf32>
    %213 = vector.multi_reduction <add>, %212, %cst_106 [2] : vector<2x8x8xf32> to vector<2x8xf32>
    %214 = vector.shape_cast %213 : vector<2x8xf32> to vector<2x8x1xf32>
    %215 = vector.broadcast %214 : vector<2x8x1xf32> to vector<2x8x8xf32>
    %216 = arith.divf %212, %215 : vector<2x8x8xf32>
    "tpu.trace_start"() <{level = 10 : i32, message = "bqk,bke->bqe"}> : () -> ()
    %cst_107 = arith.constant dense<0.000000e+00> : vector<2x8x32xf32>
    %217 = tpu.matmul %216, %206, %cst_107 {dimension_numbers = #tpu.dot_dimension_numbers<[2], [1], [1], [2], [0, 0, 0, 1, 1, 2], [0], [0]>} : vector<2x8x8xf32>, vector<2x8x32xf32>, vector<2x8x32xf32> -> vector<2x8x32xf32>
    "tpu.trace_stop"() : () -> ()
    %218 = vector.extract_strided_slice %183 {offsets = [0, 64], sizes = [16, 32], strides = [1, 1]} : vector<16x384xf32> to vector<16x32xf32>
    %219 = vector.shape_cast %218 : vector<16x32xf32> to vector<2x8x32xf32>
    %220 = vector.extract_strided_slice %183 {offsets = [0, 192], sizes = [16, 32], strides = [1, 1]} : vector<16x384xf32> to vector<16x32xf32>
    %221 = vector.shape_cast %220 : vector<16x32xf32> to vector<2x8x32xf32>
    %222 = vector.extract_strided_slice %183 {offsets = [0, 320], sizes = [16, 32], strides = [1, 1]} : vector<16x384xf32> to vector<16x32xf32>
    %223 = vector.shape_cast %222 : vector<16x32xf32> to vector<2x8x32xf32>
    "tpu.trace_start"() <{level = 10 : i32, message = "bqe,bke->bqk"}> : () -> ()
    %cst_108 = arith.constant dense<0.000000e+00> : vector<2x8x8xf32>
    %224 = tpu.matmul %219, %221, %cst_108 {dimension_numbers = #tpu.dot_dimension_numbers<[2], [2], [1], [1], [0, 0, 0, 1, 1, 1], [0], [0]>} : vector<2x8x32xf32>, vector<2x8x32xf32>, vector<2x8x8xf32> -> vector<2x8x8xf32>
    "tpu.trace_stop"() : () -> ()
    %cst_109 = arith.constant dense<0xFF800000> : vector<2x8xf32>
    %225 = vector.multi_reduction <maximumf>, %224, %cst_109 [2] : vector<2x8x8xf32> to vector<2x8xf32>
    %226 = vector.shape_cast %225 : vector<2x8xf32> to vector<2x8x1xf32>
    %227 = vector.broadcast %226 : vector<2x8x1xf32> to vector<2x8x8xf32>
    %228 = arith.subf %224, %227 : vector<2x8x8xf32>
    %229 = math.exp %228 : vector<2x8x8xf32>
    %cst_110 = arith.constant dense<0.000000e+00> : vector<2x8xf32>
    %230 = vector.multi_reduction <add>, %229, %cst_110 [2] : vector<2x8x8xf32> to vector<2x8xf32>
    %231 = vector.shape_cast %230 : vector<2x8xf32> to vector<2x8x1xf32>
    %232 = vector.broadcast %231 : vector<2x8x1xf32> to vector<2x8x8xf32>
    %233 = arith.divf %229, %232 : vector<2x8x8xf32>
    "tpu.trace_start"() <{level = 10 : i32, message = "bqk,bke->bqe"}> : () -> ()
    %cst_111 = arith.constant dense<0.000000e+00> : vector<2x8x32xf32>
    %234 = tpu.matmul %233, %223, %cst_111 {dimension_numbers = #tpu.dot_dimension_numbers<[2], [1], [1], [2], [0, 0, 0, 1, 1, 2], [0], [0]>} : vector<2x8x8xf32>, vector<2x8x32xf32>, vector<2x8x32xf32> -> vector<2x8x32xf32>
    "tpu.trace_stop"() : () -> ()
    %235 = vector.extract_strided_slice %183 {offsets = [0, 96], sizes = [16, 32], strides = [1, 1]} : vector<16x384xf32> to vector<16x32xf32>
    %236 = vector.shape_cast %235 : vector<16x32xf32> to vector<2x8x32xf32>
    %237 = vector.extract_strided_slice %183 {offsets = [0, 224], sizes = [16, 32], strides = [1, 1]} : vector<16x384xf32> to vector<16x32xf32>
    %238 = vector.shape_cast %237 : vector<16x32xf32> to vector<2x8x32xf32>
    %239 = vector.extract_strided_slice %183 {offsets = [0, 352], sizes = [16, 32], strides = [1, 1]} : vector<16x384xf32> to vector<16x32xf32>
    %240 = vector.shape_cast %239 : vector<16x32xf32> to vector<2x8x32xf32>
    "tpu.trace_start"() <{level = 10 : i32, message = "bqe,bke->bqk"}> : () -> ()
    %cst_112 = arith.constant dense<0.000000e+00> : vector<2x8x8xf32>
    %241 = tpu.matmul %236, %238, %cst_112 {dimension_numbers = #tpu.dot_dimension_numbers<[2], [2], [1], [1], [0, 0, 0, 1, 1, 1], [0], [0]>} : vector<2x8x32xf32>, vector<2x8x32xf32>, vector<2x8x8xf32> -> vector<2x8x8xf32>
    "tpu.trace_stop"() : () -> ()
    %cst_113 = arith.constant dense<0xFF800000> : vector<2x8xf32>
    %242 = vector.multi_reduction <maximumf>, %241, %cst_113 [2] : vector<2x8x8xf32> to vector<2x8xf32>
    %243 = vector.shape_cast %242 : vector<2x8xf32> to vector<2x8x1xf32>
    %244 = vector.broadcast %243 : vector<2x8x1xf32> to vector<2x8x8xf32>
    %245 = arith.subf %241, %244 : vector<2x8x8xf32>
    %246 = math.exp %245 : vector<2x8x8xf32>
    %cst_114 = arith.constant dense<0.000000e+00> : vector<2x8xf32>
    %247 = vector.multi_reduction <add>, %246, %cst_114 [2] : vector<2x8x8xf32> to vector<2x8xf32>
    %248 = vector.shape_cast %247 : vector<2x8xf32> to vector<2x8x1xf32>
    %249 = vector.broadcast %248 : vector<2x8x1xf32> to vector<2x8x8xf32>
    %250 = arith.divf %246, %249 : vector<2x8x8xf32>
    "tpu.trace_start"() <{level = 10 : i32, message = "bqk,bke->bqe"}> : () -> ()
    %cst_115 = arith.constant dense<0.000000e+00> : vector<2x8x32xf32>
    %251 = tpu.matmul %250, %240, %cst_115 {dimension_numbers = #tpu.dot_dimension_numbers<[2], [1], [1], [2], [0, 0, 0, 1, 1, 2], [0], [0]>} : vector<2x8x8xf32>, vector<2x8x32xf32>, vector<2x8x32xf32> -> vector<2x8x32xf32>
    "tpu.trace_stop"() : () -> ()
    %252 = tpu.concatenate %200, %217, %234, %251 in 2 : vector<2x8x32xf32>, vector<2x8x32xf32>, vector<2x8x32xf32>, vector<2x8x32xf32> -> vector<2x8x128xf32>
    %253 = vector.shape_cast %252 : vector<2x8x128xf32> to vector<16x128xf32>
    %254 = arith.truncf %253 : vector<16x128xf32> to vector<16x128xbf16>
    %cst_116 = arith.constant dense<0.000000e+00> : vector<16x32xf32>
    %255 = tpu.matmul %254, %163, %cst_116 {dimension_numbers = #tpu.dot_dimension_numbers<[1], [0], [0], [1], [0, 0, 1, 1], [], []>} : vector<16x128xbf16>, vector<128x32xbf16>, vector<16x32xf32> -> vector<16x32xf32>
    %256 = vector.broadcast %165 : vector<1x32xf32> to vector<16x32xf32>
    %257 = arith.addf %255, %256 : vector<16x32xf32>
    %258 = arith.addf %257, %159 : vector<16x32xf32>
    %cst_117 = arith.constant dense<0.000000e+00> : vector<16xf32>
    %259 = vector.multi_reduction <add>, %258, %cst_117 [1] : vector<16x32xf32> to vector<16xf32>
    %260 = vector.shape_cast %259 : vector<16xf32> to vector<16x1xf32>
    %cst_118 = arith.constant 3.200000e+01 : f32
    %261 = vector.broadcast %cst_118 : f32 to vector<16x1xf32>
    %262 = arith.divf %260, %261 : vector<16x1xf32>
    %263 = vector.broadcast %262 : vector<16x1xf32> to vector<16x32xf32>
    %264 = arith.subf %258, %263 : vector<16x32xf32>
    %265 = arith.mulf %264, %264 : vector<16x32xf32>
    %cst_119 = arith.constant dense<0.000000e+00> : vector<16xf32>
    %266 = vector.multi_reduction <add>, %265, %cst_119 [1] : vector<16x32xf32> to vector<16xf32>
    %267 = vector.shape_cast %266 : vector<16xf32> to vector<16x1xf32>
    %cst_120 = arith.constant 3.200000e+01 : f32
    %268 = vector.broadcast %cst_120 : f32 to vector<16x1xf32>
    %269 = arith.divf %267, %268 : vector<16x1xf32>
    %270 = vector.broadcast %262 : vector<16x1xf32> to vector<16x32xf32>
    %271 = arith.subf %258, %270 : vector<16x32xf32>
    %cst_121 = arith.constant 9.99999974E-6 : f32
    %272 = vector.broadcast %cst_121 : f32 to vector<16x1xf32>
    %273 = arith.addf %269, %272 : vector<16x1xf32>
    %274 = math.rsqrt %273 : vector<16x1xf32>
    %275 = vector.broadcast %274 : vector<16x1xf32> to vector<16x32xf32>
    %276 = arith.mulf %271, %275 : vector<16x32xf32>
    %277 = vector.broadcast %167 : vector<1x32xf32> to vector<16x32xf32>
    %278 = arith.mulf %276, %277 : vector<16x32xf32>
    %279 = vector.broadcast %169 : vector<1x32xf32> to vector<16x32xf32>
    %280 = arith.addf %278, %279 : vector<16x32xf32>
    %281 = arith.truncf %280 : vector<16x32xf32> to vector<16x32xbf16>
    %cst_122 = arith.constant dense<0.000000e+00> : vector<16x128xf32>
    %282 = tpu.matmul %281, %171, %cst_122 {dimension_numbers = #tpu.dot_dimension_numbers<[1], [0], [0], [1], [0, 0, 1, 1], [], []>} : vector<16x32xbf16>, vector<32x128xbf16>, vector<16x128xf32> -> vector<16x128xf32>
    %283 = vector.broadcast %173 : vector<1x128xf32> to vector<16x128xf32>
    %284 = arith.addf %282, %283 : vector<16x128xf32>
    %cst_123 = arith.constant 0.000000e+00 : f32
    %285 = vector.broadcast %cst_123 : f32 to vector<16x128xf32>
    %286 = arith.maximumf %284, %285 : vector<16x128xf32>
    %287 = arith.truncf %286 : vector<16x128xf32> to vector<16x128xbf16>
    %cst_124 = arith.constant dense<0.000000e+00> : vector<16x32xf32>
    %288 = tpu.matmul %287, %175, %cst_124 {dimension_numbers = #tpu.dot_dimension_numbers<[1], [0], [0], [1], [0, 0, 1, 1], [], []>} : vector<16x128xbf16>, vector<128x32xbf16>, vector<16x32xf32> -> vector<16x32xf32>
    %289 = vector.broadcast %177 : vector<1x32xf32> to vector<16x32xf32>
    %290 = arith.addf %288, %289 : vector<16x32xf32>
    %291 = arith.addf %290, %280 : vector<16x32xf32>
    %cst_125 = arith.constant dense<0.000000e+00> : vector<16xf32>
    %292 = vector.multi_reduction <add>, %291, %cst_125 [1] : vector<16x32xf32> to vector<16xf32>
    %293 = vector.shape_cast %292 : vector<16xf32> to vector<16x1xf32>
    %cst_126 = arith.constant 3.200000e+01 : f32
    %294 = vector.broadcast %cst_126 : f32 to vector<16x1xf32>
    %295 = arith.divf %293, %294 : vector<16x1xf32>
    %296 = vector.broadcast %295 : vector<16x1xf32> to vector<16x32xf32>
    %297 = arith.subf %291, %296 : vector<16x32xf32>
    %298 = arith.mulf %297, %297 : vector<16x32xf32>
    %cst_127 = arith.constant dense<0.000000e+00> : vector<16xf32>
    %299 = vector.multi_reduction <add>, %298, %cst_127 [1] : vector<16x32xf32> to vector<16xf32>
    %300 = vector.shape_cast %299 : vector<16xf32> to vector<16x1xf32>
    %cst_128 = arith.constant 3.200000e+01 : f32
    %301 = vector.broadcast %cst_128 : f32 to vector<16x1xf32>
    %302 = arith.divf %300, %301 : vector<16x1xf32>
    %303 = vector.broadcast %295 : vector<16x1xf32> to vector<16x32xf32>
    %304 = arith.subf %291, %303 : vector<16x32xf32>
    %cst_129 = arith.constant 9.99999974E-6 : f32
    %305 = vector.broadcast %cst_129 : f32 to vector<16x1xf32>
    %306 = arith.addf %302, %305 : vector<16x1xf32>
    %307 = math.rsqrt %306 : vector<16x1xf32>
    %308 = vector.broadcast %307 : vector<16x1xf32> to vector<16x32xf32>
    %309 = arith.mulf %304, %308 : vector<16x32xf32>
    %310 = vector.broadcast %179 : vector<1x32xf32> to vector<16x32xf32>
    %311 = arith.mulf %309, %310 : vector<16x32xf32>
    %312 = vector.broadcast %181 : vector<1x32xf32> to vector<16x32xf32>
    %313 = arith.addf %311, %312 : vector<16x32xf32>
    %314 = vector.shape_cast %313 : vector<16x32xf32> to vector<2x8x32xf32>
    %cst_130 = arith.constant dense<0xFF800000> : vector<2x32xf32>
    %315 = vector.multi_reduction <maximumf>, %314, %cst_130 [1] : vector<2x8x32xf32> to vector<2x32xf32>
    %316 = arith.truncf %315 : vector<2x32xf32> to vector<2x32xbf16>
    %c0_131 = arith.constant 0 : index
    %c0_132 = arith.constant 0 : index
    %317 = vector.load %arg13[%c0_131, %c0_132] : memref<32x10xbf16, #tpu.memory_space<vmem>>, vector<32x10xbf16>
    %cst_133 = arith.constant dense<0.000000e+00> : vector<2x10xf32>
    %318 = tpu.matmul %316, %317, %cst_133 {dimension_numbers = #tpu.dot_dimension_numbers<[1], [0], [0], [1], [0, 0, 1, 1], [], []>} : vector<2x32xbf16>, vector<32x10xbf16>, vector<2x10xf32> -> vector<2x10xf32>
    %c0_134 = arith.constant 0 : index
    %c0_135 = arith.constant 0 : index
    %319 = vector.load %arg14[%c0_134, %c0_135] : memref<1x10xf32, #tpu.memory_space<vmem>>, vector<1x10xf32>
    %320 = vector.broadcast %319 : vector<1x10xf32> to vector<2x10xf32>
    %321 = arith.addf %318, %320 : vector<2x10xf32>
    %cst_136 = arith.constant dense<0xFF800000> : vector<2xf32>
    %322 = vector.multi_reduction <maximumf>, %321, %cst_136 [1] : vector<2x10xf32> to vector<2xf32>
    %323 = vector.shape_cast %322 : vector<2xf32> to vector<2x1xf32>
    %324 = vector.broadcast %323 : vector<2x1xf32> to vector<2x10xf32>
    %325 = arith.subf %321, %324 : vector<2x10xf32>
    %326 = math.exp %325 : vector<2x10xf32>
    %cst_137 = arith.constant dense<0.000000e+00> : vector<2xf32>
    %327 = vector.multi_reduction <add>, %326, %cst_137 [1] : vector<2x10xf32> to vector<2xf32>
    %328 = vector.shape_cast %327 : vector<2xf32> to vector<2x1xf32>
    %329 = math.log %328 : vector<2x1xf32>
    %330 = vector.broadcast %329 : vector<2x1xf32> to vector<2x10xf32>
    %331 = arith.subf %325, %330 : vector<2x10xf32>
    %c0_138 = arith.constant 0 : index
    %c0_139 = arith.constant 0 : index
    %332 = vector.load %arg15[%c0_138, %c0_139] : memref<2x10xf32, #tpu.memory_space<vmem>>, vector<2x10xf32>
    tpu.vector_store %arg15[%c0_138, %c0_139], %331 {strides = array<i32>} : memref<2x10xf32, #tpu.memory_space<vmem>>, vector<2x10xf32>,
    return
  }
}

</mosaic_0001>

<bundles_post_ra>
// kernel: ctransformer_forward.1
= control target key start
LH: loop header
LB: loop body
LE: loop exit
PB: predicated region body
PF: predicated region fallthrough
CT: control target
= control target key end

     0   :  { %vm141_vm0 = vcmask 261120   ;;  %s3512_s0 = inlined_call_operand.vmem [shape: f32[2,8,32], index: 0, kind: input, shape index: {}]   ;;  %s3513_s1 = inlined_call_operand.vmem [shape: f32[8,32], index: 1, kind: input, shape index: {}]   ;;  %s3514_s2 = inlined_call_operand.vmem [shape: bf16[2,32,384], index: 2, kind: input, shape index: {}]   ;;  %s3515_s3 = inlined_call_operand.vmem [shape: bf16[2,128,32], index: 3, kind: input, shape index: {}]   ;;  %s3516_s4 = inlined_call_operand.vmem [shape: f32[2,1,32], index: 4, kind: input, shape index: {}]   ;;  %s3517_s5 = inlined_call_operand.vmem [shape: f32[2,1,32], index: 5, kind: input, shape index: {}]   ;;  %s3518_s6 = inlined_call_operand.vmem [shape: f32[2,1,32], index: 6, kind: input, shape index: {}]   ;;  %s3519_s7 = inlined_call_operand.vmem [shape: bf16[2,32,128], index: 7, kind: input, shape index: {}]   ;;  %s3520_s8 = inlined_call_operand.vmem [shape: f32[2,1,128], index: 8, kind: input, shape index: {}]   ;;  %s3521_s9 = inlined_call_operand.vmem [shape: bf16[2,128,32], index: 9, kind: input, shape index: {}]   ;;  %s3522_s10 = inlined_call_operand.vmem [shape: f32[2,1,32], index: 10, kind: input, shape index: {}]   ;;  %s3523_s11 = inlined_call_operand.vmem [shape: f32[2,1,32], index: 11, kind: input, shape index: {}]   ;;  %s3524_s12 = inlined_call_operand.vmem [shape: f32[2,1,32], index: 12, kind: input, shape index: {}]   ;;  %s3525_s13 = inlined_call_operand.vmem [shape: bf16[32,10], index: 13, kind: input, shape index: {}]   ;;  %s3526_s14 = inlined_call_operand.vmem [shape: f32[1,10], index: 14, kind: input, shape index: {}]   ;;  %s3527_s15 = inlined_call_operand.hbm [shape: f32[2,10], index: 15, kind: output, shape index: {}]  }
   0x1   :  { %v2290_v0 = vld [vmem:[%s3514_s2 + $0x18] sm:$0xf]  ;;  %v2588_v1 = vld [vmem:[%s3514_s2 + $0x20] sm:$0xf0]  ;;  %v2278_v2 = vld [vmem:[%s3514_s2] sm:$0xf] }
   0x2   :  { %v2291_v3 = vor.u32 %v2588_v1, %v2290_v0  ;;  %v2585_v4 = vld [vmem:[%s3514_s2 + $0x8] sm:$0xf0]  ;;  %v52_v5 = vld [vmem:[%s3512_s0] sm:$0xff]  ;;  %v2587_v8 = vld [vmem:[%s3514_s2 + $0x1c] sm:$0xf] }
   0x3   :  { %v53_v6 = vld [vmem:[%s3512_s0 + $0x8] sm:$0xff]  ;;  %v54_v7 = vld [vmem:[%s3513_s1] sm:$0xff]  ;;  %v2279_v10 = vor.u32 %v2585_v4, %v2278_v2  ;;  %v2280_v14 = vld [vmem:[%s3514_s2 + $0xc] sm:$0xf0] }
   0x4   :  { %v2292_v9 = vld [vmem:[%s3514_s2 + $0x24] sm:$0xf0]  ;;  %151 = vmatpush.bf16.msra.mxu0 %v2291_v3  ;;  %v2918_v11 = vadd.f32 %v54_v7, %v52_v5  ;;  %v2920_v12 = vadd.f32 %v54_v7, %v53_v6  ;;  %v2584_v13 = vld [vmem:[%s3514_s2 + $0x4] sm:$0xf]  ;;  %v2298_v15 = vld [vmem:[%s3514_s2 + $0x20] sm:$0xf] }
   0x5   :  { %v2295_v16 = vor.u32 %v2587_v8, %v2292_v9  ;;  %v2589_v17 = vld [vmem:[%s3514_s2 + $0x28] sm:$0xf0]  ;;  %v2286_v18 = vld [vmem:[%s3514_s2 + $0x8] sm:$0xf]  ;;  %v2586_v19 = vld [vmem:[%s3514_s2 + $0x10] sm:$0xf0]  ;;  %v2283_v23 = vor.u32 %v2584_v13, %v2280_v14 }
   0x6   :  { %v2299_v20 = vor.u32 %v2589_v17, %v2298_v15  ;;  %v108_v21 = vpack.c.bf16 %v2920_v12, %v2918_v11  ;;  %v2287_v22 = vor.u32 %v2586_v19, %v2286_v18 }
   0x8   :  { %152 = vmatpush.bf16.msra.mxu0 %v2279_v10  ;;  %179 = vmatpush.bf16.msra.mxu2 %v2299_v20 }
   0xb   :  { %2300 = vmatmul.msk.bf16.vlgmr.msra.gmra.mxu0 %vm141_vm0, %v108_v21 }
   0xc   :  { %165 = vmatpush.bf16.msrb.mxu0 %v2295_v16 }
   0xd   :  { %20 = vsyncpa [#allocation3], 0  ;;  %180 = vmatpush.bf16.msra.mxu2 %v2287_v22  ;;  %s2806_s16 = smov 96   ;;  %s2807_s17 = smov 64   ;;  %vm239_vm1 = vcmask 64512  }
   0xe   :  { %s2808_s18 = smov 32   ;;  %s2267_s26 = sshll.u32 %s3527_s15, 4  ;;  %s2268_s26 = int_to_ptr.hbm [resolvable:$true] %s2267_s26 }
  0x10   :  { %166 = vmatpush.bf16.msrb.mxu0 %v2283_v23  ;;  %2302 = vmatmul.msk.bf16.vlgmr.msra.gmra.mxu2 %vm141_vm0, %v108_v21 }
  0x1b   :  { %2301 = vmatmul.msk.bf16.vlgmr.msrb.gmra.mxu0 %vm141_vm0, %v108_v21 }
  0x88   :  { %v154_v24 = vpop.f32.mrf.mxu0 }
  0x89   :  { %334 = vrot.lane.b32.xlu2 %v154_v24, %s2806_s16 }
  0x90   :  { %v156_v25 = vpop.f32.mrf.mxu0 }
  0x91   :  { %362 = vrot.lane.b32.xlu2 %v156_v25, %s2806_s16 }
  0x93   :  { %v2959_v28 = vpop.f32.mrf.mxu2 }
  0x98   :  { %v168_v26 = vpop.f32.mrf.mxu0 }
  0x99   :  { %492 = vrot.lane.b32.xlu2 %v154_v24, %s2807_s17  ;;  %336 = vrot.lane.b32.xlu1 %v168_v26, %s2806_s16 }
  0x9a   :  { %2303 = vmatpush.xpose.msk.msrb.mxu2 %vm141_vm0, %v168_v26 }
  0x9b   :  { %v2962_v29 = vpop.f32.mrf.mxu2 }
  0x9c   :  { %329 = vmatpush.msra.mxu1 %v2962_v29  ;;  %v2639_v55 = vpack.i.bf16 %v2962_v29, %v2959_v28 }
  0x9d   :  { %2304 = vmatmul.msk.f32.vlgmr.msrb.gmra.mxu2 %vm141_vm0, %v154_v24 }
  0xa0   :  { %v170_v27 = vpop.f32.mrf.mxu0 }
  0xa1   :  { %650 = vrot.lane.b32.xlu2 %v168_v26, %s2808_s18  ;;  %364 = vrot.lane.b32.xlu1 %v170_v27, %s2806_s16 }
  0xa2   :  { %2305 = vmatpush.xpose.msk.msra.mxu3 %vm141_vm0, %v170_v27 }
  0xa5   :  { %2306 = vmatmul.msk.f32.vlgmr.msra.gmra.mxu3 %vm141_vm0, %v156_v25 }
  0xa6   :  { %306 = vmatpush.msrb.mxu3 %v2959_v28 }
  0xa9   :  { %648 = vrot.lane.b32.xlu2 %v154_v24, %s2808_s18  ;;  %522 = vrot.lane.b32.xlu1 %v170_v27, %s2807_s17 }
  0xb1   :  { %520 = vrot.lane.b32.xlu1 %v156_v25, %s2807_s17 }
  0xb9   :  { %678 = vrot.lane.b32.xlu1 %v170_v27, %s2808_s18 }
  0xe3   :  { %v2965_v31 = vpop.permute.xlu2 %334 }
  0xeb   :  { %v363_v33 = vpop.permute.xlu2 %362 }
  0xf3   :  { %v493_v8 = vpop.permute.xlu2 %492 }
  0xfb   :  { %v651_v22 = vpop.permute.xlu2 %650 }
 0x103   :  { %v649_v23 = vpop.permute.xlu2 %648 }
 0x10b   :  { %v337_v30 = vpop.permute.xlu1 %336 }
 0x10c   :  { %2309 = vmatpush.xpose.msk.msrb.mxu1 %vm141_vm0, %v337_v30 }
 0x113   :  { %v365_v32 = vpop.permute.xlu1 %364 }
 0x114   :  { %2311 = vmatpush.xpose.msk.msra.mxu2 %vm141_vm0, %v365_v32 }
 0x117   :  { %2312 = vmatmul.msk.f32.vlgmr.msra.gmra.mxu2 %vm141_vm0, %v363_v33 }
 0x11b   :  { %v523_v34 = vpop.permute.xlu1 %522 }
 0x11c   :  { %2317 = vmatpush.xpose.msk.msrb.mxu2 %vm141_vm0, %v523_v34 }
 0x120   :  { %v210_v35 = vpop.f32.mrf.mxu2 }
 0x121   :  { %v240_v36 = vsel %vm239_vm1, %v210_v35, -inf }
 0x122   :  { %241 = vmax.xlane.f32.xlu1 %v240_v36 }
 0x123   :  { %v521_v37 = vpop.permute.xlu1 %520 }
 0x124   :  { %2318 = vmatmul.msk.f32.vlgmr.msrb.gmra.mxu2 %vm141_vm0, %v521_v37 }
 0x128   :  { %v236_v38 = vpop.f32.mrf.mxu3 }
 0x129   :  { %v243_v39 = vsel %vm239_vm1, %v236_v38, -inf }
 0x12a   :  { %244 = vmax.xlane.f32.xlu0 %v243_v39 }
 0x12b   :  { %v679_v40 = vpop.permute.xlu1 %678 }
 0x12c   :  { %2323 = vmatpush.xpose.msk.msra.mxu2 %vm141_vm0, %v679_v40 }
 0x195   :  { %v242_v41 = vpop.xlane.xlu1 %241 }
 0x196   :  { %v246_v44 = vsub.f32 %v210_v35, %v242_v41 }
 0x198   :  { %v248_v47 = vmul.f32 1.442695, %v246_v44 }
 0x19a   :  { %v2975_v45 = vpop.f32.mrf.mxu2 }
 0x19b   :  { %v393_v54 = vsel %vm239_vm1, %v2975_v45, -inf }
 0x19d   :  { %v245_v42 = vpop.xlane.xlu0 %244 }
 0x19e   :  { %v247_v43 = vsub.f32 %v236_v38, %v245_v42 }
 0x1a0   :  { %v250_v46 = vmul.f32 1.442695, %v247_v43 }
 0x1a2   :  { %2694 = vpow2.f32 %v250_v46 }
 0x1a3   :  { %2696 = vpow2.f32 %v248_v47 }
 0x1a7   :  { %v2977_v48 = vpop.f32.mrf.mxu2 }
 0x1a8   :  { %v2695_v49 = vpop.eup %2694  ;;  %v551_v50 = vsel %vm239_vm1, %v2977_v48, -inf }
 0x1a9   :  { %552 = vmax.xlane.f32.xlu1 %v551_v50  ;;  %v255_v51 = vsel %vm239_vm1, %v2695_v49, 0.0  ;;  %v2697_v52 = vpop.eup %2696 }
 0x1aa   :  { %256 = vadd.xlane.f32.xlu0 %v255_v51  ;;  %v252_v53 = vsel %vm239_vm1, %v2697_v52, 0.0 }
 0x1b1   :  { %253 = vadd.xlane.f32.xlu1 %v252_v53 }
 0x1be   :  { %494 = vrot.lane.b32.xlu0 %v168_v26, %s2807_s17 }
 0x1c6   :  { %676 = vrot.lane.b32.xlu0 %v156_v25, %s2808_s18 }
 0x1ca   :  { %2640 = vrot.lane.b32.xlu1 %v2639_v55, %s2806_s16 }
 0x1f0   :  { %394 = vmax.xlane.f32.xlu0 %v393_v54 }
 0x21c   :  { %v2990_v56 = vpop.xlane.xlu1 %552 }
 0x21d   :  { %v257_v57 = vpop.xlane.xlu0 %256  ;;  %v555_v33 = vsub.f32 %v2977_v48, %v2990_v56 }
 0x21e   :  { %2698 = vrcp.f32 %v257_v57  ;;  %v284_v62 = vand.u32 2147483648, %v257_v57  ;;  %v282_v0 = vand.u32 2147483647, %v257_v57  ;;  %vm278_vm3 = vweird.f32 %v257_v57 }
 0x21f   :  { %v558_v37 = vmul.f32 1.442695, %v555_v33 }
 0x220   :  { %v285_v3 = vor.u32 1.1754944e-38, %v284_v62  ;;  %vm283_vm5 = vcmp.eq.f32.partialorder %v282_v0, 8.507059e+37 }
 0x224   :  { %v2699_v58 = vpop.eup %2698  ;;  %v254_v59 = vpop.xlane.xlu1 %253 }
 0x225   :  { %v274_v60 = vmul.f32 %v2699_v58, %v257_v57  ;;  %2700 = vrcp.f32 %v254_v59  ;;  %vm279_vm2 = vweird.f32 %v2699_v58  ;;  %v269_v9 = vand.u32 2147483648, %v254_v59 }
 0x226   :  { %vm280_vm4 = vmor %vm278_vm3, %vm279_vm2  ;;  %v267_v14 = vand.u32 2147483647, %v254_v59  ;;  %vm263_vm7 = vweird.f32 %v254_v59  ;;  %2702 = vpow2.f32 %v558_v37 }
 0x227   :  { %v275_v61 = vsub.f32 1.0, %v274_v60  ;;  %v270_v17 = vor.u32 1.1754944e-38, %v269_v9 }
 0x228   :  { %vm268_vm9 = vcmp.eq.f32.partialorder %v267_v14, 8.507059e+37 }
 0x229   :  { %v276_v63 = vmul.f32 %v2699_v58, %v275_v61 }
 0x22b   :  { %v2701_v1 = vpop.eup %2700  ;;  %v277_v2 = vadd.f32 %v2699_v58, %v276_v63 }
 0x22c   :  { %v259_v4 = vmul.f32 %v2701_v1, %v254_v59  ;;  %vm264_vm6 = vweird.f32 %v2701_v1  ;;  %v3010_v43 = vpop.eup %2702 }
 0x22d   :  { %v281_v5 = vsel %vm280_vm4, %v2699_v58, %v277_v2  ;;  %vm265_vm8 = vmor %vm263_vm7, %vm264_vm6 }
 0x22e   :  { %v260_v6 = vsub.f32 1.0, %v259_v4  ;;  %v286_v7 = vsel %vm283_vm5, %v285_v3, %v281_v5 }
 0x22f   :  { %v287_v10 = vmul.f32 %v2695_v49, %v286_v7 }
 0x230   :  { %v261_v13 = vmul.f32 %v2701_v1, %v260_v6  ;;  %v495_v15 = vpop.permute.xlu0 %494 }
 0x231   :  { %2308 = vmatmul.msk.f32.vlgmr.msra.gmra.mxu1 %vm239_vm1, %v287_v10 }
 0x232   :  { %v262_v16 = vadd.f32 %v2701_v1, %v261_v13  ;;  %2315 = vmatpush.xpose.msk.msra.mxu1 %vm141_vm0, %v495_v15 }
 0x234   :  { %v266_v18 = vsel %vm265_vm8, %v2701_v1, %v262_v16 }
 0x235   :  { %v271_v19 = vsel %vm268_vm9, %v270_v17, %v266_v18 }
 0x236   :  { %v272_v20 = vmul.f32 %v2697_v52, %v271_v19 }
 0x238   :  { %v677_v21 = vpop.permute.xlu0 %676  ;;  %2307 = vmatmul.msk.f32.vlgmr.msrb.gmra.mxu3 %vm239_vm1, %v272_v20 }
 0x239   :  { %2310 = vmatmul.msk.f32.vlgmr.msrb.gmra.mxu1 %vm141_vm0, %v2965_v31  ;;  %2324 = vmatmul.msk.f32.vlgmr.msra.gmra.mxu2 %vm141_vm0, %v677_v21 }
 0x23a   :  { %2321 = vmatpush.xpose.msk.msrb.mxu1 %vm141_vm0, %v651_v22 }
 0x23c   :  { %v2641_v24 = vpop.permute.xlu1 %2640 }
 0x23d   :  { %v2643_v25 = vunpack.i.h.bf16 %v2641_v24  ;;  %v2642_v26 = vunpack.i.l.bf16 %v2641_v24 }
 0x23f   :  { %460 = vmatpush.msra.mxu3 %v2642_v26  ;;  %487 = vmatpush.msra.mxu0 %v2643_v25 }
 0x241   :  { %2316 = vmatmul.msk.f32.vlgmr.msra.gmra.mxu1 %vm141_vm0, %v493_v8 }
 0x249   :  { %2322 = vmatmul.msk.f32.vlgmr.msrb.gmra.mxu1 %vm141_vm0, %v649_v23 }
 0x263   :  { %v395_v31 = vpop.xlane.xlu0 %394 }
 0x264   :  { %v397_v34 = vsub.f32 %v2975_v45, %v395_v31  ;;  %v563_v45 = vsel %vm239_vm1, %v3010_v43, 0.0 }
 0x266   :  { %v400_v38 = vmul.f32 1.442695, %v397_v34 }
 0x268   :  { %2704 = vpow2.f32 %v400_v38 }
 0x26e   :  { %v2705_v44 = vpop.eup %2704 }
 0x26f   :  { %v405_v46 = vsel %vm239_vm1, %v2705_v44, 0.0 }
 0x2ae   :  { %v3001_v27 = vpop.f32.mrf.mxu1 }
 0x2b6   :  { %v359_v30 = vpop.f32.mrf.mxu1 }
 0x2b7   :  { %v390_v32 = vsel %vm239_vm1, %v359_v30, -inf }
 0x2b8   :  { %391 = vmax.xlane.f32.xlu2 %v390_v32 }
 0x2bc   :  { %v701_v39 = vpop.f32.mrf.mxu2 }
 0x2bd   :  { %v707_v42 = vsel %vm239_vm1, %v701_v39, -inf }
 0x2be   :  { %v517_v35 = vpop.f32.mrf.mxu1 }
 0x2bf   :  { %v548_v36 = vsel %vm239_vm1, %v517_v35, -inf }
 0x2c0   :  { %549 = vmax.xlane.f32.xlu2 %v548_v36 }
 0x2c6   :  { %v673_v40 = vpop.f32.mrf.mxu1 }
 0x2c7   :  { %v704_v41 = vsel %vm239_vm1, %v673_v40, -inf }
 0x2c8   :  { %705 = vmax.xlane.f32.xlu0 %v704_v41  ;;  %708 = vmax.xlane.f32.xlu2 %v707_v42 }
 0x2d0   :  { %564 = vadd.xlane.f32.xlu0 %v563_v45  ;;  %406 = vadd.xlane.f32.xlu2 %v405_v46 }
 0x2e8   :  { %596 = vrot.lane.b32.xlu2 %v2959_v28, %s2807_s17 }
 0x32b   :  { %v392_v47 = vpop.xlane.xlu2 %391 }
 0x32c   :  { %v396_v56 = vsub.f32 %v359_v30, %v392_v47 }
 0x32e   :  { %v398_v60 = vmul.f32 1.442695, %v396_v56 }
 0x333   :  { %v550_v48 = vpop.xlane.xlu2 %549 }
 0x334   :  { %v554_v49 = vsub.f32 %v517_v35, %v550_v48 }
 0x336   :  { %v556_v50 = vmul.f32 1.442695, %v554_v49 }
 0x338   :  { %2706 = vpow2.f32 %v556_v50 }
 0x33b   :  { %v709_v51 = vpop.xlane.xlu2 %708  ;;  %v706_v52 = vpop.xlane.xlu0 %705 }
 0x33c   :  { %v711_v53 = vsub.f32 %v701_v39, %v709_v51  ;;  %v710_v54 = vsub.f32 %v673_v40, %v706_v52  ;;  %v2592_v39 = vld [vmem:[%s3515_s3 + $0x10] sm:$0xff] }
 0x33e   :  { %v3017_v55 = vpop.eup %2706  ;;  %v714_v57 = vmul.f32 1.442695, %v711_v53  ;;  %v712_v58 = vmul.f32 1.442695, %v710_v54 }
 0x33f   :  { %v560_v59 = vsel %vm239_vm1, %v3017_v55, 0.0 }
 0x340   :  { %2708 = vpow2.f32 %v714_v57  ;;  %561 = vadd.xlane.f32.xlu1 %v560_v59 }
 0x341   :  { %2710 = vpow2.f32 %v712_v58 }
 0x343   :  { %v407_v61 = vpop.xlane.xlu2 %406  ;;  %v565_v18 = vpop.xlane.xlu0 %564 }
 0x344   :  { %2712 = vrcp.f32 %v407_v61  ;;  %v434_v7 = vand.u32 2147483648, %v407_v61  ;;  %v432_v9 = vand.u32 2147483647, %v407_v61  ;;  %vm428_vm11 = vweird.f32 %v407_v61 }
 0x345   :  { %2714 = vpow2.f32 %v398_v60  ;;  %vm586_vm15 = vweird.f32 %v565_v18  ;;  %v592_v37 = vand.u32 2147483648, %v565_v18  ;;  %v590_v40 = vand.u32 2147483647, %v565_v18 }
 0x346   :  { %v3021_v62 = vpop.eup %2708  ;;  %v435_v14 = vor.u32 1.1754944e-38, %v434_v7  ;;  %vm433_vm13 = vcmp.eq.f32.partialorder %v432_v9, 8.507059e+37  ;;  %2716 = vrcp.f32 %v565_v18 }
 0x347   :  { %v3023_v63 = vpop.eup %2710  ;;  %v719_v0 = vsel %vm239_vm1, %v3021_v62, 0.0  ;;  %v593_v49 = vor.u32 1.1754944e-38, %v592_v37  ;;  %vm591_vm4 = vcmp.eq.f32.partialorder %v590_v40, 8.507059e+37  ;;  %v2594_v37 = vld [vmem:[%s3515_s3 + $0x20] sm:$0xff]  ;;  %v2591_v40 = vld [vmem:[%s3515_s3 + $0x8] sm:$0xff] }
 0x348   :  { %720 = vadd.xlane.f32.xlu0 %v719_v0  ;;  %v716_v1 = vsel %vm239_vm1, %v3023_v63, 0.0 }
 0x349   :  { %717 = vadd.xlane.f32.xlu2 %v716_v1 }
 0x34a   :  { %v2713_v2 = vpop.eup %2712 }
 0x34b   :  { %v424_v3 = vmul.f32 %v2713_v2, %v407_v61  ;;  %v597_v4 = vpop.permute.xlu2 %596  ;;  %v3029_v5 = vpop.eup %2714  ;;  %vm429_vm10 = vweird.f32 %v2713_v2 }
 0x34c   :  { %617 = vmatpush.msrb.mxu3 %v597_v4  ;;  %v402_v10 = vsel %vm239_vm1, %v3029_v5, 0.0  ;;  %vm430_vm12 = vmor %vm428_vm11, %vm429_vm10  ;;  %v2717_v20 = vpop.eup %2716 }
 0x34d   :  { %v425_v6 = vsub.f32 1.0, %v424_v3  ;;  %v582_v22 = vmul.f32 %v2717_v20, %v565_v18  ;;  %vm587_vm14 = vweird.f32 %v2717_v20 }
 0x34e   :  { %vm3059_vm2 = vmor %vm586_vm15, %vm587_vm14 }
 0x34f   :  { %v426_v8 = vmul.f32 %v2713_v2, %v425_v6  ;;  %v583_v23 = vsub.f32 1.0, %v582_v22 }
 0x350   :  { %403 = vadd.xlane.f32.xlu0 %v402_v10 }
 0x351   :  { %v427_v13 = vadd.f32 %v2713_v2, %v426_v8  ;;  %v584_v26 = vmul.f32 %v2717_v20, %v583_v23 }
 0x353   :  { %v431_v15 = vsel %vm430_vm12, %v2713_v2, %v427_v13  ;;  %v585_v33 = vadd.f32 %v2717_v20, %v584_v26 }
 0x354   :  { %v436_v16 = vsel %vm433_vm13, %v435_v14, %v431_v15 }
 0x355   :  { %v437_v17 = vmul.f32 %v2705_v44, %v436_v16  ;;  %v589_v42 = vsel %vm3059_vm2, %v2717_v20, %v585_v33 }
 0x356   :  { %v594_v52 = vsel %vm591_vm4, %v593_v49, %v589_v42 }
 0x357   :  { %2314 = vmatmul.msk.f32.vlgmr.msra.gmra.mxu0 %vm239_vm1, %v437_v17  ;;  %v595_v6 = vmul.f32 %v3010_v43, %v594_v52 }
 0x359   :  { %752 = vrot.lane.b32.xlu1 %v2959_v28, %s2808_s18 }
 0x361   :  { %778 = vrot.lane.b32.xlu2 %v2962_v29, %s2808_s18 }
 0x364   :  { %622 = vrot.lane.b32.xlu0 %v2962_v29, %s2807_s17 }
 0x3b3   :  { %v3040_v19 = vpop.xlane.xlu1 %561 }
 0x3b4   :  { %2718 = vrcp.f32 %v3040_v19  ;;  %v577_v58 = vand.u32 2147483648, %v3040_v19  ;;  %vm571_vm10 = vweird.f32 %v3040_v19  ;;  %v575_v61 = vand.u32 2147483647, %v3040_v19 }
 0x3b6   :  { %v578_v10 = vor.u32 1.1754944e-38, %v577_v58  ;;  %vm576_vm14 = vcmp.eq.f32.partialorder %v575_v61, 8.507059e+37 }
 0x3ba   :  { %v3046_v28 = vpop.eup %2718 }
 0x3bb   :  { %v3042_v21 = vpop.xlane.xlu0 %720  ;;  %v567_v30 = vmul.f32 %v3046_v28, %v3040_v19  ;;  %vm572_vm6 = vweird.f32 %v3046_v28 }
 0x3bc   :  { %2720 = vrcp.f32 %v3042_v21  ;;  %v3048_v24 = vpop.xlane.xlu2 %717  ;;  %v748_v0 = vand.u32 2147483648, %v3042_v21  ;;  %vm3080_vm11 = vmor %vm571_vm10, %vm572_vm6  ;;  %vm742_vm12 = vweird.f32 %v3042_v21  ;;  %v746_v3 = vand.u32 2147483647, %v3042_v21 }
 0x3bd   :  { %v568_v34 = vsub.f32 1.0, %v567_v30  ;;  %v733_v18 = vand.u32 2147483648, %v3048_v24  ;;  %v731_v19 = vand.u32 2147483647, %v3048_v24  ;;  %vm830_vm6 = vcmask 523264  }
 0x3be   :  { %v749_v14 = vor.u32 1.1754944e-38, %v748_v0  ;;  %vm747_vm15 = vcmp.eq.f32.partialorder %v746_v3, 8.507059e+37 }
 0x3bf   :  { %v569_v44 = vmul.f32 %v3046_v28, %v568_v34  ;;  %v734_v23 = vor.u32 1.1754944e-38, %v733_v18 }
 0x3c1   :  { %v570_v54 = vadd.f32 %v3046_v28, %v569_v44 }
 0x3c2   :  { %v3050_v29 = vpop.eup %2720 }
 0x3c3   :  { %v404_v25 = vpop.xlane.xlu0 %403  ;;  %v738_v32 = vmul.f32 %v3050_v29, %v3042_v21  ;;  %vm743_vm9 = vweird.f32 %v3050_v29  ;;  %v574_v7 = vsel %vm3080_vm11, %v3046_v28, %v570_v54 }
 0x3c4   :  { %2722 = vrcp.f32 %v404_v25  ;;  %v419_v45 = vand.u32 2147483648, %v404_v25  ;;  %v417_v48 = vand.u32 2147483647, %v404_v25  ;;  %vm413_vm5 = vweird.f32 %v404_v25  ;;  %vm3091_vm13 = vmor %vm742_vm12, %vm743_vm9  ;;  %v779_v43 = vpop.permute.xlu2 %778 }
 0x3c5   :  { %2724 = vrcp.f32 %v3048_v24  ;;  %v739_v38 = vsub.f32 1.0, %v738_v32  ;;  %v579_v15 = vsel %vm576_vm14, %v578_v10, %v574_v7  ;;  %v2809_v7 = vmov 32.0  }
 0x3c6   :  { %v420_v53 = vor.u32 1.1754944e-38, %v419_v45  ;;  %vm418_vm8 = vcmp.eq.f32.partialorder %v417_v48, 8.507059e+37  ;;  %v580_v20 = vmul.f32 %v3017_v55, %v579_v15  ;;  %v2597_v55 = vld [vmem:[%s3515_s3 + $0x38] sm:$0xff]  ;;  %2726 = vrcp.f32 %v2809_v7  ;;  %v2683_v7 = vld [vmem:[%s3522_s10] ss:$0 sm:$0xff] }
 0x3c7   :  { %v740_v50 = vmul.f32 %v3050_v29, %v739_v38  ;;  %888 = vmatpush.bf16.msra.mxu1 %v2597_v55  ;;  %v2593_v38 = vld [vmem:[%s3515_s3 + $0x18] sm:$0xff]  ;;  %v2598_v55 = vld [vmem:[%s3519_s7] sm:$0xff] }
 0x3c9   :  { %v741_v59 = vadd.f32 %v3050_v29, %v740_v50 }
 0x3ca   :  { %v2723_v31 = vpop.eup %2722 }
 0x3cb   :  { %v409_v35 = vmul.f32 %v2723_v31, %v404_v25  ;;  %v3057_v36 = vpop.eup %2724  ;;  %vm414_vm3 = vweird.f32 %v2723_v31  ;;  %v753_v9 = vpop.permute.xlu1 %752  ;;  %v745_v13 = vsel %vm3091_vm13, %v3050_v29, %v741_v59  ;;  %v2595_v29 = vld [vmem:[%s3515_s3 + $0x28] sm:$0xff] }
 0x3cc   :  { %v723_v46 = vmul.f32 %v3057_v36, %v3048_v24  ;;  %vm415_vm7 = vmor %vm413_vm5, %vm414_vm3  ;;  %vm728_vm2 = vweird.f32 %v3057_v36  ;;  %v750_v17 = vsel %vm747_vm15, %v749_v14, %v745_v13  ;;  %vm727_vm3 = vweird.f32 %v3048_v24  ;;  %v308_v24 = vpop.f32.mrf.mxu3 }
 0x3cd   :  { %v410_v41 = vsub.f32 1.0, %v409_v35  ;;  %vm729_vm4 = vmor %vm727_vm3, %vm728_vm2  ;;  %v751_v21 = vmul.f32 %v3021_v62, %v750_v17  ;;  %vm732_vm5 = vcmp.eq.f32.partialorder %v731_v19, 8.507059e+37  ;;  %v2596_v62 = vld [vmem:[%s3515_s3 + $0x30] sm:$0xff] }
 0x3ce   :  { %v724_v56 = vsub.f32 1.0, %v723_v46  ;;  %889 = vmatpush.bf16.msra.mxu1 %v2596_v62  ;;  %v2607_v62 = vld [vmem:[%s3521_s9 + $0x38] sm:$0xff] }
 0x3cf   :  { %v411_v47 = vmul.f32 %v2723_v31, %v410_v41  ;;  %v2590_v41 = vld [vmem:[%s3515_s3] sm:$0xff] }
 0x3d0   :  { %v725_v8 = vmul.f32 %v3057_v36, %v724_v56 }
 0x3d1   :  { %v412_v51 = vadd.f32 %v2723_v31, %v411_v47 }
 0x3d2   :  { %v726_v16 = vadd.f32 %v3057_v36, %v725_v8  ;;  %890 = vmatpush.bf16.msra.mxu1 %v2595_v29  ;;  %v2727_v8 = vpop.eup %2726 }
 0x3d3   :  { %v416_v57 = vsel %vm415_vm7, %v2723_v31, %v412_v51  ;;  %vm833_vm7 = vcmask 785408  }
 0x3d4   :  { %v421_v60 = vsel %vm418_vm8, %v420_v53, %v416_v57  ;;  %v730_v22 = vsel %vm729_vm4, %v3057_v36, %v726_v16  ;;  %v489_v26 = vpop.f32.mrf.mxu0  ;;  %vm915_vm8 = vweird.f32 %v2727_v8 }
 0x3d5   :  { %v422_v1 = vmul.f32 %v3029_v5, %v421_v60  ;;  %v735_v28 = vsel %vm732_vm5, %v734_v23, %v730_v22  ;;  %v2679_v60 = vld [vmem:[%s3516_s4] ss:$0 sm:$0xff]  ;;  %v911_v5 = vmul.f32 32.0, %v2727_v8  ;;  %v2599_v23 = vld [vmem:[%s3519_s7 + $0x8] sm:$0xff] }
 0x3d6   :  { %v623_v4 = vpop.permute.xlu0 %622  ;;  %v736_v25 = vmul.f32 %v3023_v63, %v735_v28  ;;  %891 = vmatpush.bf16.msra.mxu1 %v2594_v37  ;;  %990 = vmatpush.bf16.msrb.mxu2 %v2599_v23 }
 0x3d7   :  { %2313 = vmatmul.msk.f32.vlgmr.msra.gmra.mxu3 %vm239_vm1, %v422_v1  ;;  %643 = vmatpush.msrb.mxu0 %v623_v4 }
 0x3d8   :  { %773 = vmatpush.msra.mxu3 %v753_v9  ;;  %2320 = vmatmul.msk.f32.vlgmr.msrb.gmra.mxu0 %vm239_vm1, %v595_v6  ;;  %v912_v9 = vsub.f32 1.0, %v911_v5 }
 0x3d9   :  { %799 = vmatpush.msra.mxu0 %v779_v43 }
 0x3da   :  { %892 = vmatpush.bf16.msra.mxu1 %v2593_v38  ;;  %v913_v10 = vmul.f32 %v2727_v8, %v912_v9  ;;  %991 = vmatpush.bf16.msrb.mxu2 %v2598_v55  ;;  %v2612_v55 = vld [vmem:[%s3514_s2 + $0x50] sm:$0xf0] }
 0x3dc   :  { %v914_v13 = vadd.f32 %v2727_v8, %v913_v10 }
 0x3de   :  { %893 = vmatpush.bf16.msra.mxu1 %v2592_v39  ;;  %v3153_v43 = vsel %vm915_vm8, %v2727_v8, %v914_v13 }
 0x3df   :  { %2319 = vmatmul.msk.f32.vlgmr.msrb.gmra.mxu3 %vm239_vm1, %v580_v20 }
 0x3e0   :  { %2326 = vmatmul.msk.f32.vlgmr.msra.gmra.mxu0 %vm239_vm1, %v751_v21  ;;  %1052 = vmatpush.bf16.msrb.mxu3 %v2607_v62  ;;  %v2611_v62 = vld [vmem:[%s3514_s2 + $0x4c] sm:$0xf] }
 0x3e2   :  { %894 = vmatpush.bf16.msra.mxu1 %v2591_v40 }
 0x3e6   :  { %895 = vmatpush.bf16.msra.mxu1 %v2590_v41 }
 0x3e7   :  { %2325 = vmatmul.msk.f32.vlgmr.msra.gmra.mxu3 %vm239_vm1, %v736_v25 }
 0x455   :  { %v645_v32 = vpop.f32.mrf.mxu0 }
 0x45a   :  { %v462_v63 = vpop.f32.mrf.mxu3 }
 0x45b   :  { %v2644_v30 = vpack.i.bf16 %v489_v26, %v462_v63  ;;  %v2606_v26 = vld [vmem:[%s3521_s9 + $0x30] sm:$0xff] }
 0x45c   :  { %1053 = vmatpush.bf16.msrb.mxu3 %v2606_v26  ;;  %v2467_v26 = vld [vmem:[%s3514_s2 + $0x54] sm:$0xf0] }
 0x45d   :  { %2645 = vrot.lane.b32.xlu0 %v2644_v30, %s2808_s18  ;;  %v801_v34 = vpop.f32.mrf.mxu0 }
 0x462   :  { %v619_v31 = vpop.f32.mrf.mxu3 }
 0x463   :  { %v2649_v33 = vpack.i.bf16 %v645_v32, %v619_v31  ;;  %v2605_v31 = vld [vmem:[%s3521_s9 + $0x28] sm:$0xff] }
 0x464   :  { %1054 = vmatpush.bf16.msrb.mxu3 %v2605_v31  ;;  %v2453_v31 = vld [vmem:[%s3514_s2 + $0x30] sm:$0xf] }
 0x465   :  { %2650 = vrot.lane.b32.xlu1 %v2649_v33, %s2807_s17 }
 0x46a   :  { %v775_v35 = vpop.f32.mrf.mxu3 }
 0x46b   :  { %v2654_v36 = vpack.i.bf16 %v801_v34, %v775_v35  ;;  %v2604_v35 = vld [vmem:[%s3521_s9 + $0x20] sm:$0xff] }
 0x46c   :  { %1055 = vmatpush.bf16.msrb.mxu3 %v2604_v35  ;;  %v2608_v35 = vld [vmem:[%s3514_s2 + $0x34] sm:$0xf] }
 0x46d   :  { %2655 = vrot.lane.b32.xlu2 %v2654_v36, %s2806_s16 }
 0x4c7   :  { %v2656_v46 = vpop.permute.xlu2 %2655 }
 0x4c8   :  { %v2658_v50 = vunpack.i.h.bf16 %v2656_v46  ;;  %v2657_v51 = vunpack.i.l.bf16 %v2656_v46 }
 0x4cf   :  { %v2646_v42 = vpop.permute.xlu0 %2645 }
 0x4d0   :  { %v2648_v44 = vunpack.i.h.bf16 %v2646_v42  ;;  %v2647_v45 = vunpack.i.l.bf16 %v2646_v42 }
 0x4d2   :  { %v829_v52 = vsel %vm141_vm0, %v3001_v27, %v2648_v44  ;;  %v828_v53 = vsel %vm141_vm0, %v308_v24, %v2647_v45  ;;  %v2680_v45 = vld [vmem:[%s3517_s5] ss:$0 sm:$0xff] }
 0x4d7   :  { %v2651_v47 = vpop.permute.xlu1 %2650 }
 0x4d8   :  { %v2653_v48 = vunpack.i.h.bf16 %v2651_v47  ;;  %v2652_v49 = vunpack.i.l.bf16 %v2651_v47 }
 0x4da   :  { %v831_v54 = vsel %vm830_vm6, %v828_v53, %v2652_v49  ;;  %v832_v56 = vsel %vm830_vm6, %v829_v52, %v2653_v48  ;;  %v2681_v49 = vld [vmem:[%s3518_s6] ss:$0 sm:$0xff] }
 0x4db   :  { %v834_v57 = vsel %vm833_vm7, %v831_v54, %v2657_v51  ;;  %v835_v58 = vsel %vm833_vm7, %v832_v56, %v2658_v50 }
 0x4dc   :  { %v836_v59 = vpack.c.bf16 %v835_v58, %v834_v57  ;;  %v2603_v57 = vld [vmem:[%s3521_s9 + $0x18] sm:$0xff]  ;;  %v2602_v58 = vld [vmem:[%s3521_s9 + $0x10] sm:$0xff] }
 0x4dd   :  { %1056 = vmatpush.bf16.msrb.mxu3 %v2603_v57 }
 0x4de   :  { %896 = vmatmul.bf16.vlgmr.msra.gmra.mxu1 %v836_v59  ;;  %v2601_v59 = vld [vmem:[%s3521_s9 + $0x8] sm:$0xff] }
 0x4e1   :  { %1057 = vmatpush.bf16.msrb.mxu3 %v2602_v58 }
 0x4e5   :  { %1058 = vmatpush.bf16.msrb.mxu3 %v2601_v59 }
 0x55b   :  { %v897_v61 = vpop.f32.mrf.mxu1 }
 0x55c   :  { %v898_v0 = vadd.f32 %v2679_v60, %v897_v61 }
 0x55e   :  { %v902_v27 = vadd.f32 %v898_v0, %v2918_v11  ;;  %v2682_v0 = vld [vmem:[%s3520_s8] ss:$0 sm:$0xff] }
 0x560   :  { %v904_v1 = vsel %vm141_vm0, %v902_v27, 0.0 }
 0x561   :  { %905 = vadd.xlane.f32.xlu0 %v904_v1 }
 0x563   :  { %v899_v2 = vpop.f32.mrf.mxu1 }
 0x564   :  { %v900_v3 = vadd.f32 %v2679_v60, %v899_v2  ;;  %v2600_v60 = vld [vmem:[%s3521_s9] sm:$0xff] }
 0x565   :  { %1059 = vmatpush.bf16.msrb.mxu3 %v2600_v60 }
 0x566   :  { %v903_v4 = vadd.f32 %v900_v3, %v2920_v12 }
 0x568   :  { %v907_v6 = vsel %vm141_vm0, %v903_v4, 0.0 }
 0x569   :  { %908 = vadd.xlane.f32.xlu1 %v907_v6 }
 0x5d4   :  { %v906_v11 = vpop.xlane.xlu0 %905 }
 0x5d5   :  { %v917_v14 = vmul.f32 %v3153_v43, %v906_v11 }
 0x5d7   :  { %v919_v15 = vsub.f32 %v902_v27, %v917_v14 }
 0x5d9   :  { %v921_v16 = vmul.f32 %v919_v15, %v919_v15 }
 0x5db   :  { %v923_v12 = vsel %vm141_vm0, %v921_v16, 0.0 }
 0x5dc   :  { %v909_v17 = vpop.xlane.xlu1 %908  ;;  %924 = vadd.xlane.f32.xlu2 %v923_v12 }
 0x5dd   :  { %v918_v18 = vmul.f32 %v3153_v43, %v909_v17 }
 0x5df   :  { %v920_v19 = vsub.f32 %v903_v4, %v918_v18 }
 0x5e1   :  { %v922_v20 = vmul.f32 %v920_v19, %v920_v19 }
 0x5e3   :  { %v926_v21 = vsel %vm141_vm0, %v922_v20, 0.0 }
 0x5e4   :  { %927 = vadd.xlane.f32.xlu0 %v926_v21 }
 0x64f   :  { %v925_v22 = vpop.xlane.xlu2 %924 }
 0x650   :  { %v929_v28 = vmul.f32 %v925_v22, %v3153_v43 }
 0x652   :  { %v931_v25 = vadd.f32 1e-05, %v929_v28 }
 0x654   :  { %2728 = vrsqrt.f32 %v931_v25  ;;  %vm939_vm10 = vweird.f32 %v931_v25 }
 0x657   :  { %v928_v24 = vpop.xlane.xlu0 %927 }
 0x658   :  { %v930_v29 = vmul.f32 %v928_v24, %v3153_v43 }
 0x65a   :  { %v2729_v63 = vpop.eup %2728  ;;  %v932_v30 = vadd.f32 1e-05, %v930_v29 }
 0x65b   :  { %v934_v32 = vmul.f32 %v2729_v63, %v931_v25  ;;  %vm940_vm9 = vweird.f32 %v2729_v63  ;;  %v2465_v25 = vld [vmem:[%s3514_s2 + $0x48] sm:$0xf] }
 0x65c   :  { %2730 = vrsqrt.f32 %v932_v30  ;;  %vm941_vm11 = vmor %vm939_vm10, %vm940_vm9  ;;  %vm949_vm13 = vweird.f32 %v932_v30  ;;  %v2466_v29 = vor.u32 %v2612_v55, %v2465_v25 }
 0x65d   :  { %v935_v33 = vmul.f32 %v2729_v63, %v934_v32 }
 0x65e   :  { %1226 = vmatpush.bf16.msrb.mxu0 %v2466_v29 }
 0x65f   :  { %v936_v34 = vmul.f32 0.5, %v935_v33  ;;  %v2609_v33 = vld [vmem:[%s3514_s2 + $0x38] sm:$0xf0] }
 0x661   :  { %v937_v36 = vsub.f32 1.5, %v936_v34  ;;  %v2454_v34 = vor.u32 %v2609_v33, %v2453_v31 }
 0x662   :  { %v2731_v37 = vpop.eup %2730 }
 0x663   :  { %v938_v38 = vmul.f32 %v2729_v63, %v937_v36  ;;  %v944_v39 = vmul.f32 %v2731_v37, %v932_v30  ;;  %vm950_vm12 = vweird.f32 %v2731_v37  ;;  %v2470_v30 = vor.u32 %v2611_v62, %v2467_v26  ;;  %v2455_v36 = vld [vmem:[%s3514_s2 + $0x3c] sm:$0xf0]  ;;  %1227 = vmatpush.bf16.msrb.mxu0 %v2454_v34 }
 0x664   :  { %vm951_vm14 = vmor %vm949_vm13, %vm950_vm12 }
 0x665   :  { %v945_v40 = vmul.f32 %v2731_v37, %v944_v39  ;;  %v942_v41 = vsel %vm941_vm11, %v2729_v63, %v938_v38  ;;  %1240 = vmatpush.bf16.msra.mxu2 %v2470_v30  ;;  %v2473_v38 = vld [vmem:[%s3514_s2 + $0x50] sm:$0xf]  ;;  %v2613_v39 = vld [vmem:[%s3514_s2 + $0x58] sm:$0xf0] }
 0x666   :  { %v953_v46 = vmul.f32 %v942_v41, %v919_v15 }
 0x667   :  { %v946_v42 = vmul.f32 0.5, %v945_v40  ;;  %v2461_v40 = vld [vmem:[%s3514_s2 + $0x38] sm:$0xf] }
 0x668   :  { %v958_v50 = vmul.f32 %v2680_v45, %v953_v46 }
 0x669   :  { %v947_v44 = vsub.f32 1.5, %v946_v42  ;;  %v2474_v42 = vor.u32 %v2613_v39, %v2473_v38 }
 0x66a   :  { %v963_v53 = vadd.f32 %v2681_v49, %v958_v50 }
 0x66b   :  { %v948_v47 = vmul.f32 %v2731_v37, %v947_v44  ;;  %v2610_v44 = vld [vmem:[%s3514_s2 + $0x40] sm:$0xf0]  ;;  %1254 = vmatpush.bf16.msra.mxu0 %v2474_v42 }
 0x66c   :  { %v2462_v46 = vor.u32 %v2610_v44, %v2461_v40 }
 0x66d   :  { %v952_v48 = vsel %vm951_vm14, %v2731_v37, %v948_v47  ;;  %v2458_v37 = vor.u32 %v2608_v35, %v2455_v36 }
 0x66e   :  { %v954_v51 = vmul.f32 %v952_v48, %v920_v19 }
 0x66f   :  { %1241 = vmatpush.bf16.msra.mxu2 %v2458_v37  ;;  %1255 = vmatpush.bf16.msra.mxu0 %v2462_v46 }
 0x670   :  { %v959_v52 = vmul.f32 %v2680_v45, %v954_v51 }
 0x672   :  { %v964_v54 = vadd.f32 %v2681_v49, %v959_v52 }
 0x674   :  { %v965_v56 = vpack.c.bf16 %v964_v54, %v963_v53 }
 0x676   :  { %2367 = vmatmul.msk.bf16.vlgmr.msrb.gmra.mxu2 %vm141_vm0, %v965_v56 }
 0x6f9   :  { %v993_v61 = vpop.f32.mrf.mxu2 }
 0x6fa   :  { %v994_v27 = vadd.f32 %v2682_v0, %v993_v61  ;;  %v2684_v61 = vld [vmem:[%s3523_s11] ss:$0 sm:$0xff] }
 0x6fc   :  { %v998_v3 = vmax.f32 %v994_v27, 0.0 }
 0x701   :  { %v995_v1 = vpop.f32.mrf.mxu2 }
 0x702   :  { %v996_v2 = vadd.f32 %v2682_v0, %v995_v1 }
 0x704   :  { %v999_v4 = vmax.f32 %v996_v2, 0.0  ;;  %v2685_v2 = vld [vmem:[%s3524_s12] ss:$0 sm:$0xff] }
 0x706   :  { %v1000_v6 = vpack.c.bf16 %v999_v4, %v998_v3 }
 0x708   :  { %1060 = vmatmul.bf16.vlgmr.msrb.gmra.mxu3 %v1000_v6 }
 0x78b   :  { %v1061_v8 = vpop.f32.mrf.mxu3 }
 0x78c   :  { %v1062_v5 = vadd.f32 %v2683_v7, %v1061_v8 }
 0x78e   :  { %v1066_v9 = vadd.f32 %v1062_v5, %v963_v53 }
 0x790   :  { %v1068_v10 = vsel %vm141_vm0, %v1066_v9, 0.0 }
 0x791   :  { %1069 = vadd.xlane.f32.xlu1 %v1068_v10 }
 0x793   :  { %v1063_v13 = vpop.f32.mrf.mxu3 }
 0x794   :  { %v1064_v11 = vadd.f32 %v2683_v7, %v1063_v13 }
 0x796   :  { %v1067_v14 = vadd.f32 %v1064_v11, %v964_v54 }
 0x798   :  { %v1071_v15 = vsel %vm141_vm0, %v1067_v14, 0.0 }
 0x799   :  { %1072 = vadd.xlane.f32.xlu2 %v1071_v15 }
 0x804   :  { %v1070_v16 = vpop.xlane.xlu1 %1069 }
 0x805   :  { %v1074_v12 = vmul.f32 %v1070_v16, %v3153_v43 }
 0x807   :  { %v1076_v17 = vsub.f32 %v1066_v9, %v1074_v12 }
 0x809   :  { %v1078_v18 = vmul.f32 %v1076_v17, %v1076_v17 }
 0x80b   :  { %v1080_v19 = vsel %vm141_vm0, %v1078_v18, 0.0 }
 0x80c   :  { %v1073_v20 = vpop.xlane.xlu2 %1072  ;;  %1081 = vadd.xlane.f32.xlu0 %v1080_v19 }
 0x80d   :  { %v1075_v21 = vmul.f32 %v1073_v20, %v3153_v43 }
 0x80f   :  { %v1077_v22 = vsub.f32 %v1067_v14, %v1075_v21 }
 0x811   :  { %v1079_v23 = vmul.f32 %v1077_v22, %v1077_v22 }
 0x813   :  { %v1083_v28 = vsel %vm141_vm0, %v1079_v23, 0.0 }
 0x814   :  { %1084 = vadd.xlane.f32.xlu1 %v1083_v28 }
 0x87f   :  { %v1082_v24 = vpop.xlane.xlu0 %1081 }
 0x880   :  { %v1086_v63 = vmul.f32 %v1082_v24, %v3153_v43 }
 0x882   :  { %v1088_v32 = vadd.f32 1e-05, %v1086_v63 }
 0x884   :  { %2732 = vrsqrt.f32 %v1088_v32  ;;  %vm1096_vm2 = vweird.f32 %v1088_v32 }
 0x887   :  { %v1085_v41 = vpop.xlane.xlu1 %1084 }
 0x888   :  { %v1087_v45 = vmul.f32 %v1085_v41, %v3153_v43 }
 0x88a   :  { %v2733_v47 = vpop.eup %2732  ;;  %v1089_v48 = vadd.f32 1e-05, %v1087_v45 }
 0x88b   :  { %v1091_v49 = vmul.f32 %v2733_v47, %v1088_v32  ;;  %vm1097_vm15 = vweird.f32 %v2733_v47 }
 0x88c   :  { %2734 = vrsqrt.f32 %v1089_v48  ;;  %vm1098_vm3 = vmor %vm1096_vm2, %vm1097_vm15  ;;  %vm1106_vm5 = vweird.f32 %v1089_v48 }
 0x88d   :  { %v1092_v50 = vmul.f32 %v2733_v47, %v1091_v49 }
 0x88f   :  { %v1093_v51 = vmul.f32 0.5, %v1092_v50 }
 0x891   :  { %v1094_v52 = vsub.f32 1.5, %v1093_v51 }
 0x892   :  { %v2735_v53 = vpop.eup %2734 }
 0x893   :  { %v1095_v54 = vmul.f32 %v2733_v47, %v1094_v52  ;;  %v1101_v56 = vmul.f32 %v2735_v53, %v1089_v48  ;;  %vm1107_vm4 = vweird.f32 %v2735_v53 }
 0x894   :  { %vm1108_vm8 = vmor %vm1106_vm5, %vm1107_vm4 }
 0x895   :  { %v1102_v57 = vmul.f32 %v2735_v53, %v1101_v56  ;;  %v1099_v58 = vsel %vm1098_vm3, %v2733_v47, %v1095_v54 }
 0x896   :  { %v1110_v0 = vmul.f32 %v1099_v58, %v1076_v17 }
 0x897   :  { %v1103_v59 = vmul.f32 0.5, %v1102_v57 }
 0x898   :  { %v1115_v3 = vmul.f32 %v2684_v61, %v1110_v0 }
 0x899   :  { %v1104_v60 = vsub.f32 1.5, %v1103_v59 }
 0x89a   :  { %v3254_v7 = vadd.f32 %v2685_v2, %v1115_v3 }
 0x89b   :  { %v1105_v27 = vmul.f32 %v2735_v53, %v1104_v60 }
 0x89d   :  { %v1109_v1 = vsel %vm1108_vm8, %v2735_v53, %v1105_v27 }
 0x89e   :  { %v1111_v4 = vmul.f32 %v1109_v1, %v1077_v22 }
 0x8a0   :  { %v1116_v6 = vmul.f32 %v2684_v61, %v1111_v4 }
 0x8a2   :  { %v3256_v8 = vadd.f32 %v2685_v2, %v1116_v6 }
 0x8a4   :  { %v1184_v5 = vpack.c.bf16 %v3256_v8, %v3254_v7 }
 0x8a6   :  { %2475 = vmatmul.msk.bf16.vlgmr.msrb.gmra.mxu0 %vm141_vm0, %v1184_v5  ;;  %2476 = vmatmul.msk.bf16.vlgmr.msra.gmra.mxu2 %vm141_vm0, %v1184_v5 }
 0x8b6   :  { %2477 = vmatmul.msk.bf16.vlgmr.msra.gmra.mxu0 %vm141_vm0, %v1184_v5 }
 0x923   :  { %v1229_v9 = vpop.f32.mrf.mxu0 }
 0x924   :  { %1408 = vrot.lane.b32.xlu1 %v1229_v9, %s2806_s16 }
 0x929   :  { %v1243_v10 = vpop.f32.mrf.mxu2 }
 0x92a   :  { %1410 = vrot.lane.b32.xlu2 %v1243_v10, %s2806_s16  ;;  %2478 = vmatpush.xpose.msk.msrb.mxu2 %vm141_vm0, %v1243_v10 }
 0x92b   :  { %v1231_v13 = vpop.f32.mrf.mxu0 }
 0x92c   :  { %1436 = vrot.lane.b32.xlu0 %v1231_v13, %s2806_s16 }
 0x92d   :  { %2479 = vmatmul.msk.f32.vlgmr.msrb.gmra.mxu2 %vm141_vm0, %v1229_v9 }
 0x931   :  { %v1245_v11 = vpop.f32.mrf.mxu2 }
 0x932   :  { %1568 = vrot.lane.b32.xlu2 %v1243_v10, %s2807_s17  ;;  %2480 = vmatpush.xpose.msk.msrb.mxu0 %vm141_vm0, %v1245_v11 }
 0x933   :  { %1596 = vrot.lane.b32.xlu1 %v1245_v11, %s2807_s17  ;;  %v3271_v14 = vpop.f32.mrf.mxu0 }
 0x934   :  { %1438 = vrot.lane.b32.xlu0 %v1245_v11, %s2806_s16  ;;  %1380 = vmatpush.msrb.mxu1 %v3271_v14 }
 0x935   :  { %2481 = vmatmul.msk.f32.vlgmr.msrb.gmra.mxu0 %vm141_vm0, %v1231_v13 }
 0x93a   :  { %1594 = vrot.lane.b32.xlu2 %v1231_v13, %s2807_s17 }
 0x93b   :  { %1724 = vrot.lane.b32.xlu1 %v1243_v10, %s2808_s18  ;;  %v3278_v15 = vpop.f32.mrf.mxu0 }
 0x93c   :  { %1566 = vrot.lane.b32.xlu0 %v1229_v9, %s2807_s17  ;;  %1403 = vmatpush.msra.mxu2 %v3278_v15  ;;  %v2659_v52 = vpack.i.bf16 %v3271_v14, %v3278_v15 }
 0x942   :  { %1722 = vrot.lane.b32.xlu2 %v1229_v9, %s2808_s18 }
 0x943   :  { %1750 = vrot.lane.b32.xlu1 %v1231_v13, %s2808_s18 }
 0x944   :  { %1752 = vrot.lane.b32.xlu0 %v1245_v11, %s2808_s18 }
 0x984   :  { %v1411_v16 = vpop.permute.xlu2 %1410 }
 0x985   :  { %2484 = vmatpush.xpose.msk.msra.mxu3 %vm141_vm0, %v1411_v16 }
 0x98c   :  { %v1569_v12 = vpop.permute.xlu2 %1568 }
 0x98d   :  { %2490 = vmatpush.xpose.msk.msrb.mxu3 %vm141_vm0, %v1569_v12 }
 0x994   :  { %v1595_v21 = vpop.permute.xlu2 %1594 }
 0x996   :  { %v1409_v17 = vpop.permute.xlu1 %1408 }
 0x997   :  { %2485 = vmatmul.msk.f32.vlgmr.msra.gmra.mxu3 %vm141_vm0, %v1409_v17 }
 0x99c   :  { %v1723_v24 = vpop.permute.xlu2 %1722 }
 0x99e   :  { %v1437_v18 = vpop.permute.xlu0 %1436 }
 0x9a5   :  { %v1597_v19 = vpop.permute.xlu1 %1596 }
 0x9a6   :  { %v1439_v20 = vpop.permute.xlu0 %1438 }
 0x9a7   :  { %2486 = vmatpush.xpose.msk.msra.mxu0 %vm141_vm0, %v1439_v20 }
 0x9aa   :  { %2487 = vmatmul.msk.f32.vlgmr.msra.gmra.mxu0 %vm141_vm0, %v1437_v18 }
 0x9ab   :  { %2492 = vmatpush.xpose.msk.msrb.mxu0 %vm141_vm0, %v1597_v19 }
 0x9ad   :  { %v1725_v22 = vpop.permute.xlu1 %1724 }
 0x9ae   :  { %2496 = vmatpush.xpose.msk.msra.mxu3 %vm141_vm0, %v1725_v22  ;;  %v1567_v23 = vpop.permute.xlu0 %1566 }
 0x9af   :  { %2491 = vmatmul.msk.f32.vlgmr.msrb.gmra.mxu3 %vm141_vm0, %v1567_v23 }
 0x9b0   :  { %v1285_v28 = vpop.f32.mrf.mxu2 }
 0x9b1   :  { %v1314_v25 = vsel %vm239_vm1, %v1285_v28, -inf }
 0x9b2   :  { %1315 = vmax.xlane.f32.xlu2 %v1314_v25  ;;  %v1311_v55 = vpop.f32.mrf.mxu0  ;;  %2493 = vmatmul.msk.f32.vlgmr.msrb.gmra.mxu0 %vm141_vm0, %v1595_v21 }
 0x9b3   :  { %v1317_v62 = vsel %vm239_vm1, %v1311_v55, -inf }
 0x9b4   :  { %1318 = vmax.xlane.f32.xlu0 %v1317_v62 }
 0x9b5   :  { %v1751_v26 = vpop.permute.xlu1 %1750 }
 0x9b6   :  { %v1753_v29 = vpop.permute.xlu0 %1752 }
 0x9b7   :  { %2497 = vmatmul.msk.f32.vlgmr.msra.gmra.mxu3 %vm141_vm0, %v1723_v24  ;;  %2498 = vmatpush.xpose.msk.msra.mxu0 %vm141_vm0, %v1753_v29 }
 0x9ba   :  { %2499 = vmatmul.msk.f32.vlgmr.msra.gmra.mxu0 %vm141_vm0, %v1751_v26 }
 0xa1a   :  { %v1433_v63 = vpop.f32.mrf.mxu3 }
 0xa1b   :  { %v1464_v30 = vsel %vm239_vm1, %v1433_v63, -inf }
 0xa1c   :  { %1465 = vmax.xlane.f32.xlu0 %v1464_v30 }
 0xa25   :  { %v1316_v32 = vpop.xlane.xlu2 %1315 }
 0xa26   :  { %v1320_v31 = vsub.f32 %v1285_v28, %v1316_v32 }
 0xa27   :  { %v1461_v33 = vpop.f32.mrf.mxu0  ;;  %v1319_v34 = vpop.xlane.xlu0 %1318 }
 0xa28   :  { %v1322_v35 = vmul.f32 1.442695, %v1320_v31  ;;  %v1467_v36 = vsel %vm239_vm1, %v1461_v33, -inf  ;;  %v1321_v37 = vsub.f32 %v1311_v55, %v1319_v34 }
 0xa29   :  { %1468 = vmax.xlane.f32.xlu1 %v1467_v36 }
 0xa2a   :  { %2736 = vpow2.f32 %v1322_v35  ;;  %v1324_v38 = vmul.f32 1.442695, %v1321_v37 }
 0xa2c   :  { %2738 = vpow2.f32 %v1324_v38 }
 0xa2f   :  { %v1619_v39 = vpop.f32.mrf.mxu0 }
 0xa30   :  { %v3301_v40 = vpop.eup %2736  ;;  %v1625_v41 = vsel %vm239_vm1, %v1619_v39, -inf }
 0xa31   :  { %1626 = vmax.xlane.f32.xlu2 %v1625_v41  ;;  %v1326_v42 = vsel %vm239_vm1, %v3301_v40, 0.0 }
 0xa32   :  { %v1591_v44 = vpop.f32.mrf.mxu3  ;;  %1327 = vadd.xlane.f32.xlu0 %v1326_v42  ;;  %v3307_v47 = vpop.eup %2738 }
 0xa33   :  { %v1622_v45 = vsel %vm239_vm1, %v1591_v44, -inf  ;;  %v1329_v51 = vsel %vm239_vm1, %v3307_v47, 0.0 }
 0xa34   :  { %1623 = vmax.xlane.f32.xlu1 %v1622_v45 }
 0xa37   :  { %v1775_v46 = vpop.f32.mrf.mxu0 }
 0xa38   :  { %v1781_v48 = vsel %vm239_vm1, %v1775_v46, -inf }
 0xa3a   :  { %v1747_v49 = vpop.f32.mrf.mxu3  ;;  %1782 = vmax.xlane.f32.xlu0 %v1781_v48 }
 0xa3b   :  { %v1778_v50 = vsel %vm239_vm1, %v1747_v49, -inf }
 0xa3c   :  { %1779 = vmax.xlane.f32.xlu2 %v1778_v50  ;;  %1330 = vadd.xlane.f32.xlu1 %v1329_v51 }
 0xa4e   :  { %2660 = vrot.lane.b32.xlu0 %v2659_v52, %s2806_s16 }
 0xa8f   :  { %v1466_v53 = vpop.xlane.xlu0 %1465 }
 0xa90   :  { %v1470_v54 = vsub.f32 %v1433_v63, %v1466_v53 }
 0xa92   :  { %v1472_v56 = vmul.f32 1.442695, %v1470_v54 }
 0xa94   :  { %2740 = vpow2.f32 %v1472_v56 }
 0xa9a   :  { %v3316_v57 = vpop.eup %2740 }
 0xa9b   :  { %v1476_v58 = vsel %vm239_vm1, %v3316_v57, 0.0 }
 0xa9c   :  { %v1469_v59 = vpop.xlane.xlu1 %1468  ;;  %1477 = vadd.xlane.f32.xlu1 %v1476_v58 }
 0xa9d   :  { %v1471_v60 = vsub.f32 %v1461_v33, %v1469_v59 }
 0xa9f   :  { %v1474_v61 = vmul.f32 1.442695, %v1471_v60 }
 0xaa1   :  { %2742 = vpow2.f32 %v1474_v61 }
 0xaa4   :  { %v1627_v0 = vpop.xlane.xlu2 %1626 }
 0xaa5   :  { %v1629_v27 = vsub.f32 %v1619_v39, %v1627_v0  ;;  %v1328_v1 = vpop.xlane.xlu0 %1327 }
 0xaa6   :  { %2744 = vrcp.f32 %v1328_v1  ;;  %v1343_v20 = vand.u32 2147483648, %v1328_v1  ;;  %v1341_v28 = vand.u32 2147483647, %v1328_v1  ;;  %vm1337_vm10 = vweird.f32 %v1328_v1 }
 0xaa7   :  { %v3320_v2 = vpop.eup %2742  ;;  %v1632_v3 = vmul.f32 1.442695, %v1629_v27  ;;  %v1624_v4 = vpop.xlane.xlu1 %1623 }
 0xaa8   :  { %v1628_v6 = vsub.f32 %v1591_v44, %v1624_v4  ;;  %v1479_v5 = vsel %vm239_vm1, %v3320_v2, 0.0  ;;  %v1344_v26 = vor.u32 1.1754944e-38, %v1343_v20  ;;  %vm1342_vm12 = vcmp.eq.f32.partialorder %v1341_v28, 8.507059e+37 }
 0xaa9   :  { %2746 = vpow2.f32 %v1632_v3  ;;  %1480 = vadd.xlane.f32.xlu2 %v1479_v5 }
 0xaaa   :  { %v1630_v9 = vmul.f32 1.442695, %v1628_v6 }
 0xaac   :  { %v2745_v10 = vpop.eup %2744  ;;  %2748 = vpow2.f32 %v1630_v9 }
 0xaad   :  { %v1333_v13 = vmul.f32 %v2745_v10, %v1328_v1  ;;  %v1783_v11 = vpop.xlane.xlu0 %1782  ;;  %vm1338_vm9 = vweird.f32 %v2745_v10 }
 0xaae   :  { %v1785_v16 = vsub.f32 %v1775_v46, %v1783_v11  ;;  %vm1339_vm11 = vmor %vm1337_vm10, %vm1338_vm9 }
 0xaaf   :  { %v3324_v12 = vpop.eup %2746  ;;  %v1334_v17 = vsub.f32 1.0, %v1333_v13  ;;  %v1780_v18 = vpop.xlane.xlu2 %1779 }
 0xab0   :  { %v1331_v19 = vpop.xlane.xlu1 %1330  ;;  %v1788_v21 = vmul.f32 1.442695, %v1785_v16  ;;  %v1784_v22 = vsub.f32 %v1747_v49, %v1780_v18  ;;  %v1637_v25 = vsel %vm239_vm1, %v3324_v12, 0.0 }
 0xab1   :  { %2750 = vrcp.f32 %v1331_v19  ;;  %v1335_v23 = vmul.f32 %v2745_v10, %v1334_v17  ;;  %1638 = vadd.xlane.f32.xlu0 %v1637_v25  ;;  %v1358_v38 = vand.u32 2147483648, %v1331_v19  ;;  %v1356_v41 = vand.u32 2147483647, %v1331_v19 }
 0xab2   :  { %v3328_v55 = vpop.eup %2748  ;;  %2752 = vpow2.f32 %v1788_v21  ;;  %v1786_v62 = vmul.f32 1.442695, %v1784_v22  ;;  %vm1352_vm14 = vweird.f32 %v1331_v19 }
 0xab3   :  { %v1336_v24 = vadd.f32 %v2745_v10, %v1335_v23  ;;  %v1634_v29 = vsel %vm239_vm1, %v3328_v55, 0.0  ;;  %v1359_v44 = vor.u32 1.1754944e-38, %v1358_v38  ;;  %vm1357_vm2 = vcmp.eq.f32.partialorder %v1356_v41, 8.507059e+37 }
 0xab4   :  { %2754 = vpow2.f32 %v1786_v62  ;;  %1635 = vadd.xlane.f32.xlu2 %v1634_v29 }
 0xab5   :  { %v1340_v63 = vsel %vm1339_vm11, %v2745_v10, %v1336_v24 }
 0xab6   :  { %v1345_v32 = vsel %vm1342_vm12, %v1344_v26, %v1340_v63 }
 0xab7   :  { %v2751_v30 = vpop.eup %2750  ;;  %v1346_v33 = vmul.f32 %v3301_v40, %v1345_v32 }
 0xab8   :  { %v1348_v31 = vmul.f32 %v2751_v30, %v1331_v19  ;;  %v3333_v34 = vpop.eup %2752  ;;  %vm1353_vm13 = vweird.f32 %v2751_v30 }
 0xab9   :  { %2482 = vmatmul.msk.f32.vlgmr.msrb.gmra.mxu1 %vm239_vm1, %v1346_v33  ;;  %v1793_v36 = vsel %vm239_vm1, %v3333_v34, 0.0  ;;  %vm1354_vm15 = vmor %vm1352_vm14, %vm1353_vm13 }
 0xaba   :  { %v1349_v35 = vsub.f32 1.0, %v1348_v31  ;;  %v3338_v37 = vpop.eup %2754  ;;  %1794 = vadd.xlane.f32.xlu1 %v1793_v36 }
 0xabb   :  { %v1790_v42 = vsel %vm239_vm1, %v3338_v37, 0.0 }
 0xabc   :  { %v1350_v39 = vmul.f32 %v2751_v30, %v1349_v35  ;;  %1791 = vadd.xlane.f32.xlu2 %v1790_v42 }
 0xabe   :  { %v1351_v40 = vadd.f32 %v2751_v30, %v1350_v39 }
 0xac0   :  { %v1355_v45 = vsel %vm1354_vm15, %v2751_v30, %v1351_v40  ;;  %v2661_v48 = vpop.permute.xlu0 %2660 }
 0xac1   :  { %v1360_v46 = vsel %vm1357_vm2, %v1359_v44, %v1355_v45  ;;  %v2663_v49 = vunpack.i.h.bf16 %v2661_v48  ;;  %v2662_v50 = vunpack.i.l.bf16 %v2661_v48 }
 0xac2   :  { %v1361_v51 = vmul.f32 %v3307_v47, %v1360_v46 }
 0xac3   :  { %1534 = vmatpush.msra.mxu1 %v2663_v49  ;;  %1561 = vmatpush.msrb.mxu2 %v2662_v50 }
 0xac4   :  { %2483 = vmatmul.msk.f32.vlgmr.msra.gmra.mxu2 %vm239_vm1, %v1361_v51 }
 0xac5   :  { %1852 = vrot.lane.b32.xlu0 %v3278_v15, %s2808_s18 }
 0xacd   :  { %1826 = vrot.lane.b32.xlu0 %v3271_v14, %s2808_s18 }
 0xad3   :  { %1696 = vrot.lane.b32.xlu1 %v3278_v15, %s2807_s17 }
 0xad4   :  { %1670 = vrot.lane.b32.xlu2 %v3271_v14, %s2807_s17 }
 0xb0f   :  { %v1478_v52 = vpop.xlane.xlu1 %1477 }
 0xb10   :  { %2756 = vrcp.f32 %v1478_v52  ;;  %v1493_v56 = vand.u32 2147483648, %v1478_v52  ;;  %v1491_v59 = vand.u32 2147483647, %v1478_v52  ;;  %vm1487_vm4 = vweird.f32 %v1478_v52 }
 0xb12   :  { %v1494_v0 = vor.u32 1.1754944e-38, %v1493_v56  ;;  %vm1492_vm8 = vcmp.eq.f32.partialorder %v1491_v59, 8.507059e+37 }
 0xb16   :  { %v2757_v53 = vpop.eup %2756 }
 0xb17   :  { %v1483_v47 = vmul.f32 %v2757_v53, %v1478_v52  ;;  %vm1488_vm3 = vweird.f32 %v2757_v53 }
 0xb18   :  { %vm1489_vm5 = vmor %vm1487_vm4, %vm1488_vm3 }
 0xb19   :  { %v1484_v54 = vsub.f32 1.0, %v1483_v47 }
 0xb1b   :  { %v1485_v58 = vmul.f32 %v2757_v53, %v1484_v54 }
 0xb1c   :  { %v1481_v60 = vpop.xlane.xlu2 %1480 }
 0xb1d   :  { %v1486_v61 = vadd.f32 %v2757_v53, %v1485_v58  ;;  %2758 = vrcp.f32 %v1481_v60  ;;  %v1508_v5 = vand.u32 2147483648, %v1481_v60  ;;  %v1506_v13 = vand.u32 2147483647, %v1481_v60 }
 0xb1e   :  { %vm1502_vm10 = vweird.f32 %v1481_v60 }
 0xb1f   :  { %v1490_v27 = vsel %vm1489_vm5, %v2757_v53, %v1486_v61  ;;  %v1509_v16 = vor.u32 1.1754944e-38, %v1508_v5  ;;  %vm1507_vm12 = vcmp.eq.f32.partialorder %v1506_v13, 8.507059e+37 }
 0xb20   :  { %v1495_v15 = vsel %vm1492_vm8, %v1494_v0, %v1490_v27 }
 0xb21   :  { %v1496_v14 = vmul.f32 %v3316_v57, %v1495_v15 }
 0xb23   :  { %v2759_v1 = vpop.eup %2758  ;;  %2488 = vmatmul.msk.f32.vlgmr.msra.gmra.mxu1 %vm239_vm1, %v1496_v14 }
 0xb24   :  { %v1498_v3 = vmul.f32 %v2759_v1, %v1481_v60  ;;  %v3354_v4 = vpop.xlane.xlu0 %1638  ;;  %vm1503_vm9 = vweird.f32 %v2759_v1 }
 0xb25   :  { %2760 = vrcp.f32 %v3354_v4  ;;  %vm1504_vm11 = vmor %vm1502_vm10, %vm1503_vm9  ;;  %vm1660_vm5 = vweird.f32 %v3354_v4  ;;  %v1666_v50 = vand.u32 2147483648, %v3354_v4 }
 0xb26   :  { %v1499_v6 = vsub.f32 1.0, %v1498_v3 }
 0xb27   :  { %v1636_v9 = vpop.xlane.xlu2 %1635  ;;  %v1667_v58 = vor.u32 1.1754944e-38, %v1666_v50 }
 0xb28   :  { %v1500_v10 = vmul.f32 %v2759_v1, %v1499_v6  ;;  %2762 = vrcp.f32 %v1636_v9  ;;  %v1649_v62 = vand.u32 2147483647, %v1636_v9  ;;  %v1651_v24 = vand.u32 2147483648, %v1636_v9 }
 0xb29   :  { %vm1645_vm14 = vweird.f32 %v1636_v9 }
 0xb2a   :  { %v1501_v11 = vadd.f32 %v2759_v1, %v1500_v10  ;;  %vm1650_vm2 = vcmp.eq.f32.partialorder %v1649_v62, 8.507059e+37  ;;  %v1652_v31 = vor.u32 1.1754944e-38, %v1651_v24  ;;  %v2615_v62 = vld [vmem:[%s3515_s3 + $0x48] sm:$0xff]  ;;  %v2614_v24 = vld [vmem:[%s3515_s3 + $0x40] sm:$0xff] }
 0xb2b   :  { %v3357_v57 = vpop.eup %2760 }
 0xb2c   :  { %v1505_v17 = vsel %vm1504_vm11, %v2759_v1, %v1501_v11  ;;  %v1656_v21 = vmul.f32 %v3357_v57, %v3354_v4  ;;  %vm1661_vm3 = vweird.f32 %v3357_v57 }
 0xb2d   :  { %v1510_v18 = vsel %vm1507_vm12, %v1509_v16, %v1505_v17  ;;  %v3359_v19 = vpop.xlane.xlu1 %1794  ;;  %vm3374_vm8 = vmor %vm1660_vm5, %vm1661_vm3 }
 0xb2e   :  { %v2763_v20 = vpop.eup %2762  ;;  %2764 = vrcp.f32 %v3359_v19  ;;  %v1511_v28 = vmul.f32 %v3320_v2, %v1510_v18  ;;  %v1657_v29 = vsub.f32 1.0, %v1656_v21  ;;  %v1822_v15 = vand.u32 2147483648, %v3359_v19  ;;  %v2620_v21 = vld [vmem:[%s3515_s3 + $0x70] sm:$0xff] }
 0xb2f   :  { %v1641_v22 = vmul.f32 %v2763_v20, %v1636_v9  ;;  %v1792_v23 = vpop.xlane.xlu2 %1791  ;;  %vm1646_vm13 = vweird.f32 %v2763_v20  ;;  %v1820_v14 = vand.u32 2147483647, %v3359_v19 }
 0xb30   :  { %2766 = vrcp.f32 %v1792_v23  ;;  %2489 = vmatmul.msk.f32.vlgmr.msrb.gmra.mxu2 %vm239_vm1, %v1511_v28  ;;  %vm1647_vm15 = vmor %vm1645_vm14, %vm1646_vm13  ;;  %v1658_v33 = vmul.f32 %v3357_v57, %v1657_v29  ;;  %v1805_v44 = vand.u32 2147483647, %v1792_v23  ;;  %v1807_v45 = vand.u32 2147483648, %v1792_v23  ;;  %v2617_v28 = vld [vmem:[%s3515_s3 + $0x58] sm:$0xff] }
 0xb31   :  { %v1642_v25 = vsub.f32 1.0, %v1641_v22  ;;  %vm1801_vm9 = vweird.f32 %v1792_v23  ;;  %vm1816_vm14 = vweird.f32 %v3359_v19  ;;  %v2619_v22 = vld [vmem:[%s3515_s3 + $0x68] sm:$0xff] }
 0xb32   :  { %v1659_v46 = vadd.f32 %v3357_v57, %v1658_v33  ;;  %v1808_v53 = vor.u32 1.1754944e-38, %v1807_v45  ;;  %vm1806_vm11 = vcmp.eq.f32.partialorder %v1805_v44, 8.507059e+37  ;;  %v2686_v45 = vld [vmem:[%s3516_s4 + $0x1] ss:$0 sm:$0xff] }
 0xb33   :  { %v1643_v26 = vmul.f32 %v2763_v20, %v1642_v25  ;;  %v2616_v25 = vld [vmem:[%s3515_s3 + $0x50] sm:$0xff] }
 0xb34   :  { %v2765_v63 = vpop.eup %2764  ;;  %v1663_v47 = vsel %vm3374_vm8, %v3357_v57, %v1659_v46 }
 0xb35   :  { %v1644_v30 = vadd.f32 %v2763_v20, %v1643_v26  ;;  %v1812_v2 = vmul.f32 %v2765_v63, %v3359_v19  ;;  %vm1817_vm13 = vweird.f32 %v2765_v63 }
 0xb36   :  { %v2767_v32 = vpop.eup %2766  ;;  %v1382_v9 = vpop.f32.mrf.mxu1 }
 0xb37   :  { %v1648_v35 = vsel %vm1647_vm15, %v2763_v20, %v1644_v30  ;;  %v1797_v36 = vmul.f32 %v2767_v32, %v1792_v23  ;;  %v1671_v38 = vpop.permute.xlu2 %1670  ;;  %v1853_v41 = vpop.permute.xlu0 %1852  ;;  %v1813_v48 = vsub.f32 1.0, %v1812_v2  ;;  %vm1802_vm4 = vweird.f32 %v2767_v32  ;;  %vm1818_vm15 = vmor %vm1816_vm14, %vm1817_vm13  ;;  %v2618_v23 = vld [vmem:[%s3515_s3 + $0x60] sm:$0xff] }
 0xb38   :  { %v1653_v39 = vsel %vm1650_vm2, %v1652_v31, %v1648_v35  ;;  %1691 = vmatpush.msrb.mxu1 %v1671_v38  ;;  %vm1803_vm10 = vmor %vm1801_vm9, %vm1802_vm4  ;;  %vm1821_vm2 = vcmp.eq.f32.partialorder %v1820_v14, 8.507059e+37  ;;  %vm2215_vm14 = vcmask 1041409  }
 0xb39   :  { %v1798_v42 = vsub.f32 1.0, %v1797_v36  ;;  %v1654_v40 = vmul.f32 %v3328_v55, %v1653_v39  ;;  %v1664_v55 = vand.u32 2147483647, %v3354_v4  ;;  %v1814_v54 = vmul.f32 %v2765_v63, %v1813_v48 }
 0xb3b   :  { %v1799_v49 = vmul.f32 %v2767_v32, %v1798_v42  ;;  %2494 = vmatmul.msk.f32.vlgmr.msrb.gmra.mxu1 %vm239_vm1, %v1654_v40  ;;  %vm1665_vm12 = vcmp.eq.f32.partialorder %v1664_v55, 8.507059e+37  ;;  %v1815_v27 = vadd.f32 %v2765_v63, %v1814_v54 }
 0xb3c   :  { %v1668_v0 = vsel %vm1665_vm12, %v1667_v58, %v1663_v47 }
 0xb3d   :  { %v1800_v52 = vadd.f32 %v2767_v32, %v1799_v49  ;;  %v1669_v3 = vmul.f32 %v3324_v12, %v1668_v0  ;;  %v1819_v4 = vsel %vm1818_vm15, %v2765_v63, %v1815_v27  ;;  %vm2246_vm15 = vcmask 74752  }
 0xb3f   :  { %v1804_v56 = vsel %vm1803_vm10, %v2767_v32, %v1800_v52  ;;  %v1827_v60 = vpop.permute.xlu0 %1826 }
 0xb40   :  { %v1809_v59 = vsel %vm1806_vm11, %v1808_v53, %v1804_v56  ;;  %1847 = vmatpush.msra.mxu1 %v1827_v60 }
 0xb41   :  { %v1810_v61 = vmul.f32 %v3338_v37, %v1809_v59  ;;  %v1823_v37 = vor.u32 1.1754944e-38, %v1822_v15  ;;  %v2623_v15 = vld [vmem:[%s3519_s7 + $0x18] sm:$0xff] }
 0xb42   :  { %2055 = vmatpush.bf16.msrb.mxu0 %v2623_v15 }
 0xb43   :  { %2500 = vmatmul.msk.f32.vlgmr.msra.gmra.mxu1 %vm239_vm1, %v1810_v61  ;;  %v1824_v6 = vsel %vm1821_vm2, %v1823_v37, %v1819_v4  ;;  %v2631_v4 = vld [vmem:[%s3521_s9 + $0x78] sm:$0xff] }
 0xb44   :  { %v1825_v5 = vmul.f32 %v3333_v34, %v1824_v6  ;;  %v2621_v34 = vld [vmem:[%s3515_s3 + $0x78] sm:$0xff]  ;;  %2117 = vmatpush.bf16.msrb.mxu1 %v2631_v4 }
 0xb45   :  { %v1697_v1 = vpop.permute.xlu1 %1696  ;;  %1960 = vmatpush.bf16.msrb.mxu3 %v2621_v34 }
 0xb46   :  { %1717 = vmatpush.msra.mxu2 %v1697_v1 }
 0xb47   :  { %2495 = vmatmul.msk.f32.vlgmr.msra.gmra.mxu2 %vm239_vm1, %v1669_v3  ;;  %v1405_v10 = vpop.f32.mrf.mxu2  ;;  %v2622_v3 = vld [vmem:[%s3519_s7 + $0x10] sm:$0xff] }
 0xb48   :  { %1873 = vmatpush.msrb.mxu2 %v1853_v41  ;;  %2056 = vmatpush.bf16.msrb.mxu0 %v2622_v3 }
 0xb49   :  { %1961 = vmatpush.bf16.msrb.mxu3 %v2620_v21 }
 0xb4d   :  { %1962 = vmatpush.bf16.msrb.mxu3 %v2619_v22 }
 0xb4f   :  { %2501 = vmatmul.msk.f32.vlgmr.msrb.gmra.mxu2 %vm239_vm1, %v1825_v5  ;;  %v2630_v5 = vld [vmem:[%s3521_s9 + $0x70] sm:$0xff] }
 0xb50   :  { %2118 = vmatpush.bf16.msrb.mxu1 %v2630_v5 }
 0xb51   :  { %1963 = vmatpush.bf16.msrb.mxu3 %v2618_v23 }
 0xb55   :  { %1964 = vmatpush.bf16.msrb.mxu3 %v2617_v28  ;;  %v2687_v28 = vld [vmem:[%s3517_s5 + $0x1] ss:$0 sm:$0xff] }
 0xb59   :  { %1965 = vmatpush.bf16.msrb.mxu3 %v2616_v25 }
 0xb5d   :  { %1966 = vmatpush.bf16.msrb.mxu3 %v2615_v62 }
 0xb61   :  { %1967 = vmatpush.bf16.msrb.mxu3 %v2614_v24 }
 0xba0   :  { %v1536_v13 = vpop.f32.mrf.mxu1 }
 0xbb3   :  { %v1563_v11 = vpop.f32.mrf.mxu2 }
 0xbb4   :  { %v2664_v16 = vpack.i.bf16 %v1563_v11, %v1536_v13  ;;  %v2629_v11 = vld [vmem:[%s3521_s9 + $0x68] sm:$0xff] }
 0xbb5   :  { %2119 = vmatpush.bf16.msrb.mxu1 %v2629_v11 }
 0xbb6   :  { %2665 = vrot.lane.b32.xlu1 %v2664_v16, %s2808_s18 }
 0xbb8   :  { %v1693_v12 = vpop.f32.mrf.mxu1 }
 0xbc0   :  { %v1849_v18 = vpop.f32.mrf.mxu1 }
 0xbca   :  { %v1719_v57 = vpop.f32.mrf.mxu2 }
 0xbcb   :  { %v2669_v17 = vpack.i.bf16 %v1719_v57, %v1693_v12  ;;  %v2628_v57 = vld [vmem:[%s3521_s9 + $0x60] sm:$0xff] }
 0xbcc   :  { %2120 = vmatpush.bf16.msrb.mxu1 %v2628_v57 }
 0xbcd   :  { %2670 = vrot.lane.b32.xlu2 %v2669_v17, %s2807_s17 }
 0xbd2   :  { %v1875_v19 = vpop.f32.mrf.mxu2 }
 0xbd3   :  { %v2674_v20 = vpack.i.bf16 %v1875_v19, %v1849_v18 }
 0xbd5   :  { %2675 = vrot.lane.b32.xlu0 %v2674_v20, %s2806_s16 }
 0xc27   :  { %v2671_v30 = vpop.permute.xlu2 %2670 }
 0xc28   :  { %v2666_v29 = vpop.permute.xlu1 %2665  ;;  %v2673_v33 = vunpack.i.h.bf16 %v2671_v30  ;;  %v2672_v35 = vunpack.i.l.bf16 %v2671_v30 }
 0xc29   :  { %v2668_v26 = vunpack.i.h.bf16 %v2666_v29  ;;  %v2667_v63 = vunpack.i.l.bf16 %v2666_v29  ;;  %v2688_v29 = vld [vmem:[%s3518_s6 + $0x1] ss:$0 sm:$0xff] }
 0xc2b   :  { %v1903_v32 = vsel %vm141_vm0, %v1405_v10, %v2668_v26  ;;  %v1902_v31 = vsel %vm141_vm0, %v1382_v9, %v2667_v63 }
 0xc2c   :  { %v1904_v39 = vsel %vm830_vm6, %v1902_v31, %v2672_v35  ;;  %v1905_v41 = vsel %vm830_vm6, %v1903_v32, %v2673_v33  ;;  %v2627_v35 = vld [vmem:[%s3521_s9 + $0x58] sm:$0xff] }
 0xc2d   :  { %2121 = vmatpush.bf16.msrb.mxu1 %v2627_v35 }
 0xc47   :  { %v2676_v2 = vpop.permute.xlu0 %2675 }
 0xc48   :  { %v2678_v36 = vunpack.i.h.bf16 %v2676_v2  ;;  %v2677_v38 = vunpack.i.l.bf16 %v2676_v2  ;;  %v2626_v2 = vld [vmem:[%s3521_s9 + $0x50] sm:$0xff] }
 0xc49   :  { %2122 = vmatpush.bf16.msrb.mxu1 %v2626_v2 }
 0xc4a   :  { %v1907_v42 = vsel %vm833_vm7, %v1905_v41, %v2678_v36  ;;  %v1906_v40 = vsel %vm833_vm7, %v1904_v39, %v2677_v38  ;;  %v2625_v36 = vld [vmem:[%s3521_s9 + $0x48] sm:$0xff]  ;;  %v2624_v38 = vld [vmem:[%s3521_s9 + $0x40] sm:$0xff] }
 0xc4b   :  { %v1908_v44 = vpack.c.bf16 %v1907_v42, %v1906_v40  ;;  %v2689_v41 = vld [vmem:[%s3520_s8 + $0x1] ss:$0 sm:$0xff] }
 0xc4d   :  { %1968 = vmatmul.bf16.vlgmr.msrb.gmra.mxu3 %v1908_v44  ;;  %2123 = vmatpush.bf16.msrb.mxu1 %v2625_v36 }
 0xc51   :  { %2124 = vmatpush.bf16.msrb.mxu1 %v2624_v38 }
 0xcd0   :  { %v1969_v46 = vpop.f32.mrf.mxu3 }
 0xcd1   :  { %v1970_v48 = vadd.f32 %v2686_v45, %v1969_v46 }
 0xcd3   :  { %v1974_v49 = vadd.f32 %v1970_v48, %v3254_v7 }
 0xcd5   :  { %v1976_v50 = vsel %vm141_vm0, %v1974_v49, 0.0 }
 0xcd6   :  { %1977 = vadd.xlane.f32.xlu1 %v1976_v50 }
 0xcd8   :  { %v1971_v51 = vpop.f32.mrf.mxu3 }
 0xcd9   :  { %v1972_v55 = vadd.f32 %v2686_v45, %v1971_v51 }
 0xcdb   :  { %v1975_v52 = vadd.f32 %v1972_v55, %v3256_v8 }
 0xcdd   :  { %v1979_v53 = vsel %vm141_vm0, %v1975_v52, 0.0 }
 0xcde   :  { %1980 = vadd.xlane.f32.xlu2 %v1979_v53 }
 0xd49   :  { %v1978_v47 = vpop.xlane.xlu1 %1977 }
 0xd4a   :  { %v1982_v54 = vmul.f32 %v1978_v47, %v3153_v43 }
 0xd4c   :  { %v1984_v56 = vsub.f32 %v1974_v49, %v1982_v54  ;;  %v2690_v49 = vld [vmem:[%s3522_s10 + $0x1] ss:$0 sm:$0xff] }
 0xd4e   :  { %v1986_v58 = vmul.f32 %v1984_v56, %v1984_v56 }
 0xd50   :  { %v1988_v59 = vsel %vm141_vm0, %v1986_v58, 0.0 }
 0xd51   :  { %v1981_v60 = vpop.xlane.xlu2 %1980  ;;  %1989 = vadd.xlane.f32.xlu0 %v1988_v59 }
 0xd52   :  { %v1983_v7 = vmul.f32 %v1981_v60, %v3153_v43 }
 0xd54   :  { %v1985_v61 = vsub.f32 %v1975_v52, %v1983_v7 }
 0xd56   :  { %v1987_v0 = vmul.f32 %v1985_v61, %v1985_v61 }
 0xd58   :  { %v1991_v27 = vsel %vm141_vm0, %v1987_v0, 0.0 }
 0xd59   :  { %1992 = vadd.xlane.f32.xlu1 %v1991_v27 }
 0xdc4   :  { %v1990_v8 = vpop.xlane.xlu0 %1989 }
 0xdc5   :  { %v1994_v14 = vmul.f32 %v1990_v8, %v3153_v43 }
 0xdc7   :  { %v1996_v1 = vadd.f32 1e-05, %v1994_v14 }
 0xdc9   :  { %2768 = vrsqrt.f32 %v1996_v1  ;;  %vm2004_vm6 = vweird.f32 %v1996_v1 }
 0xdcc   :  { %v1993_v37 = vpop.xlane.xlu1 %1992 }
 0xdcd   :  { %v1995_v6 = vmul.f32 %v1993_v37, %v3153_v43 }
 0xdcf   :  { %v2769_v9 = vpop.eup %2768  ;;  %v1997_v10 = vadd.f32 1e-05, %v1995_v6 }
 0xdd0   :  { %v1999_v13 = vmul.f32 %v2769_v9, %v1996_v1  ;;  %vm2005_vm1 = vweird.f32 %v2769_v9 }
 0xdd1   :  { %2770 = vrsqrt.f32 %v1997_v10  ;;  %vm2006_vm7 = vmor %vm2004_vm6, %vm2005_vm1  ;;  %vm2014_vm4 = vweird.f32 %v1997_v10 }
 0xdd2   :  { %v2000_v16 = vmul.f32 %v2769_v9, %v1999_v13  ;;  %v2633_v13 = vld [vmem:[%s3525_s13 + $0x8] sm:$0xff] }
 0xdd3   :  { %2239 = vmatpush.bf16.msra.mxu2 %v2633_v13 }
 0xdd4   :  { %v2001_v12 = vmul.f32 0.5, %v2000_v16  ;;  %v2632_v16 = vld [vmem:[%s3525_s13] sm:$0xff]  ;;  %s2810_s13 = smov [#allocation2]  }
 0xdd6   :  { %v2002_v17 = vsub.f32 1.5, %v2001_v12 }
 0xdd7   :  { %v2771_v18 = vpop.eup %2770  ;;  %2240 = vmatpush.bf16.msra.mxu2 %v2632_v16 }
 0xdd8   :  { %v2003_v19 = vmul.f32 %v2769_v9, %v2002_v17  ;;  %v2009_v20 = vmul.f32 %v2771_v18, %v1997_v10  ;;  %vm2015_vm3 = vweird.f32 %v2771_v18 }
 0xdd9   :  { %vm2016_vm5 = vmor %vm2014_vm4, %vm2015_vm3 }
 0xdda   :  { %v2010_v34 = vmul.f32 %v2771_v18, %v2009_v20  ;;  %v2007_v21 = vsel %vm2006_vm7, %v2769_v9, %v2003_v19  ;;  %v2691_v19 = vld [vmem:[%s3523_s11 + $0x1] ss:$0 sm:$0xff] }
 0xddb   :  { %v2018_v25 = vmul.f32 %v2007_v21, %v1984_v56  ;;  %v2692_v21 = vld [vmem:[%s3524_s12 + $0x1] ss:$0 sm:$0xff] }
 0xddc   :  { %v2011_v22 = vmul.f32 0.5, %v2010_v34 }
 0xddd   :  { %v2023_v26 = vmul.f32 %v2687_v28, %v2018_v25 }
 0xdde   :  { %v2012_v23 = vsub.f32 1.5, %v2011_v22 }
 0xddf   :  { %v2028_v32 = vadd.f32 %v2688_v29, %v2023_v26 }
 0xde0   :  { %v2013_v62 = vmul.f32 %v2771_v18, %v2012_v23 }
 0xde2   :  { %v2017_v24 = vsel %vm2016_vm5, %v2771_v18, %v2013_v62 }
 0xde3   :  { %v2019_v63 = vmul.f32 %v2017_v24, %v1985_v61 }
 0xde5   :  { %v2024_v30 = vmul.f32 %v2687_v28, %v2019_v63 }
 0xde7   :  { %v2029_v31 = vadd.f32 %v2688_v29, %v2024_v30 }
 0xde9   :  { %v2030_v33 = vpack.c.bf16 %v2029_v31, %v2028_v32 }
 0xdeb   :  { %2542 = vmatmul.msk.bf16.vlgmr.msrb.gmra.mxu0 %vm141_vm0, %v2030_v33 }
 0xe68   :  { %v2058_v39 = vpop.f32.mrf.mxu0 }
 0xe69   :  { %v2059_v42 = vadd.f32 %v2689_v41, %v2058_v39 }
 0xe6b   :  { %v2063_v45 = vmax.f32 %v2059_v42, 0.0 }
 0xe70   :  { %v2060_v40 = vpop.f32.mrf.mxu0 }
 0xe71   :  { %v2061_v44 = vadd.f32 %v2689_v41, %v2060_v40 }
 0xe73   :  { %v2064_v46 = vmax.f32 %v2061_v44, 0.0 }
 0xe75   :  { %v2065_v48 = vpack.c.bf16 %v2064_v46, %v2063_v45 }
 0xe77   :  { %2125 = vmatmul.bf16.vlgmr.msrb.gmra.mxu1 %v2065_v48 }
 0xef4   :  { %v2126_v50 = vpop.f32.mrf.mxu1 }
 0xef5   :  { %v2127_v51 = vadd.f32 %v2690_v49, %v2126_v50 }
 0xef7   :  { %v2131_v55 = vadd.f32 %v2127_v51, %v2028_v32 }
 0xef9   :  { %v2133_v52 = vsel %vm141_vm0, %v2131_v55, 0.0 }
 0xefa   :  { %2134 = vadd.xlane.f32.xlu2 %v2133_v52 }
 0xefc   :  { %v2128_v53 = vpop.f32.mrf.mxu1 }
 0xefd   :  { %v2129_v47 = vadd.f32 %v2690_v49, %v2128_v53  ;;  %v2693_v53 = vld [vmem:[%s3526_s14] ss:$0 sm:$0xff]  ;;  %s2265_s14 = sshll.u32 %s2810_s13, 4  ;;  %s2266_s14 = int_to_ptr.vmem [resolvable:$true] %s2265_s14 }
 0xeff   :  { %v2132_v54 = vadd.f32 %v2129_v47, %v2029_v31 }
 0xf01   :  { %v2136_v56 = vsel %vm141_vm0, %v2132_v54, 0.0 }
 0xf02   :  { %2137 = vadd.xlane.f32.xlu0 %v2136_v56 }
 0xf6d   :  { %v2135_v58 = vpop.xlane.xlu2 %2134 }
 0xf6e   :  { %v2139_v59 = vmul.f32 %v2135_v58, %v3153_v43 }
 0xf70   :  { %v2141_v60 = vsub.f32 %v2131_v55, %v2139_v59 }
 0xf72   :  { %v2143_v7 = vmul.f32 %v2141_v60, %v2141_v60 }
 0xf74   :  { %v2145_v61 = vsel %vm141_vm0, %v2143_v7, 0.0 }
 0xf75   :  { %v2138_v0 = vpop.xlane.xlu0 %2137  ;;  %2146 = vadd.xlane.f32.xlu1 %v2145_v61 }
 0xf76   :  { %v2140_v27 = vmul.f32 %v2138_v0, %v3153_v43 }
 0xf78   :  { %v2142_v8 = vsub.f32 %v2132_v54, %v2140_v27 }
 0xf7a   :  { %v2144_v15 = vmul.f32 %v2142_v8, %v2142_v8 }
 0xf7c   :  { %v2148_v14 = vsel %vm141_vm0, %v2144_v15, 0.0 }
 0xf7d   :  { %2149 = vadd.xlane.f32.xlu2 %v2148_v14 }
 0xfe8   :  { %v2147_v1 = vpop.xlane.xlu1 %2146 }
 0xfe9   :  { %v2151_v3 = vmul.f32 %v2147_v1, %v3153_v43 }
 0xfeb   :  { %v2153_v4 = vadd.f32 1e-05, %v2151_v3 }
 0xfed   :  { %2772 = vrsqrt.f32 %v2153_v4  ;;  %vm2161_vm9 = vweird.f32 %v2153_v4 }
 0xff0   :  { %v2150_v37 = vpop.xlane.xlu2 %2149 }
 0xff1   :  { %v2152_v6 = vmul.f32 %v2150_v37, %v3153_v43 }
 0xff3   :  { %v2773_v5 = vpop.eup %2772  ;;  %v2154_v9 = vadd.f32 1e-05, %v2152_v6 }
 0xff4   :  { %v2156_v10 = vmul.f32 %v2773_v5, %v2153_v4  ;;  %vm2162_vm8 = vweird.f32 %v2773_v5 }
 0xff5   :  { %2774 = vrsqrt.f32 %v2154_v9  ;;  %vm2163_vm10 = vmor %vm2161_vm9, %vm2162_vm8  ;;  %vm2171_vm12 = vweird.f32 %v2154_v9 }
 0xff6   :  { %v2157_v11 = vmul.f32 %v2773_v5, %v2156_v10 }
 0xff8   :  { %v2158_v12 = vmul.f32 0.5, %v2157_v11 }
 0xffa   :  { %v2159_v57 = vsub.f32 1.5, %v2158_v12 }
 0xffb   :  { %v2775_v17 = vpop.eup %2774 }
 0xffc   :  { %v2160_v43 = vmul.f32 %v2773_v5, %v2159_v57  ;;  %v2166_v18 = vmul.f32 %v2775_v17, %v2154_v9  ;;  %vm2172_vm11 = vweird.f32 %v2775_v17 }
 0xffd   :  { %vm2173_vm13 = vmor %vm2171_vm12, %vm2172_vm11 }
 0xffe   :  { %v2164_v20 = vsel %vm2163_vm10, %v2773_v5, %v2160_v43  ;;  %v2167_v34 = vmul.f32 %v2775_v17, %v2166_v18 }
 0xfff   :  { %v2175_v22 = vmul.f32 %v2164_v20, %v2141_v60 }
0x1000   :  { %v2168_v23 = vmul.f32 0.5, %v2167_v34 }
0x1001   :  { %v2180_v28 = vmul.f32 %v2691_v19, %v2175_v22 }
0x1002   :  { %v2169_v25 = vsub.f32 1.5, %v2168_v23 }
0x1003   :  { %v2185_v62 = vadd.f32 %v2692_v21, %v2180_v28 }
0x1004   :  { %v2170_v24 = vmul.f32 %v2775_v17, %v2169_v25 }
0x1005   :  { %v2187_v29 = vsel %vm141_vm0, %v2185_v62, -inf }
0x1006   :  { %v2188_v26 = vrot.slane %v2187_v29, 4  ;;  %v2174_v63 = vsel %vm2173_vm13, %v2775_v17, %v2170_v24 }
0x1007   :  { %v2176_v30 = vmul.f32 %v2174_v63, %v2142_v8 }
0x1008   :  { %v2189_v32 = vmax.f32 %v2187_v29, %v2188_v26 }
0x1009   :  { %v2181_v31 = vmul.f32 %v2691_v19, %v2176_v30 }
0x100a   :  { %v2190_v33 = vrot.slane %v2189_v32, 2 }
0x100b   :  { %v2186_v35 = vadd.f32 %v2692_v21, %v2181_v31 }
0x100c   :  { %v2191_v2 = vmax.f32 %v2189_v32, %v2190_v33 }
0x100d   :  { %v2194_v36 = vsel %vm141_vm0, %v2186_v35, -inf }
0x100e   :  { %v2195_v38 = vrot.slane %v2194_v36, 4  ;;  %v2192_v41 = vrot.slane %v2191_v2, 1 }
0x1010   :  { %v2196_v39 = vmax.f32 %v2194_v36, %v2195_v38  ;;  %v2193_v44 = vmax.f32 %v2191_v2, %v2192_v41 }
0x1012   :  { %v2197_v42 = vrot.slane %v2196_v39, 2  ;;  %v2201_v48 = vpack.c.bf16 %v2193_v44, %v2193_v44 }
0x1014   :  { %v2198_v40 = vmax.f32 %v2196_v39, %v2197_v42  ;;  %v2213_v50 = vunpack.c.l.b16 %v2201_v48 }
0x1016   :  { %v2199_v45 = vrot.slane %v2198_v40, 1 }
0x1018   :  { %v2200_v46 = vmax.f32 %v2198_v40, %v2199_v45 }
0x101a   :  { %v2202_v49 = vpack.c.bf16 %v2200_v46, %v2200_v46 }
0x101c   :  { %v2214_v51 = vunpack.c.l.b16 %v2202_v49 }
0x101e   :  { %v2216_v55 = vsel %vm2215_vm14, %v2214_v51, %v2213_v50 }
0x101f   :  { %v2217_v52 = vpack.c.b16 %v2216_v55, %v2216_v55 }
0x1021   :  { %2583 = vmatmul.msk.bf16.vlgmr.msra.gmra.mxu2 %vm141_vm0, %v2217_v52 }
0x10a4   :  { %v2242_v47 = vpop.f32.mrf.mxu2 }
0x10a5   :  { %v2243_v54 = vadd.f32 %v2693_v53, %v2242_v47 }
0x10a7   :  { %v2247_v56 = vsel %vm2246_vm15, %v2243_v54, -inf }
0x10a8   :  { %2248 = vmax.xlane.f32.xlu0 %v2247_v56 }
0x10ac   :  { %v2244_v58 = vpop.f32.mrf.mxu2 }
0x111b   :  { %v2249_v59 = vpop.xlane.xlu0 %2248 }
0x111c   :  { %v2250_v60 = vsub.f32 %v2243_v54, %v2249_v59 }
0x111e   :  { %v2251_v7 = vmul.f32 1.442695, %v2250_v60 }
0x1120   :  { %2776 = vpow2.f32 %v2251_v7 }
0x1126   :  { %v2777_v61 = vpop.eup %2776 }
0x1127   :  { %v2253_v0 = vsel %vm2246_vm15, %v2777_v61, 0.0 }
0x1128   :  { %2254 = vadd.xlane.f32.xlu1 %v2253_v0 }
0x119b   :  { %v2255_v27 = vpop.xlane.xlu1 %2254 }
0x119c   :  { %2778 = vlog2.f32 %v2255_v27 }
0x11a2   :  { %v2779_v8 = vpop.eup %2778 }
0x11a3   :  { %v2257_v15 = vmul.f32 0.6931472, %v2779_v8 }
0x11a5   :  { %v2258_v14 = vsub.f32 %v2250_v60, %v2257_v15 }
0x11a7   :  { %2259 = vst.msk [vmem:[#allocation2] sm:$0x3] %vm2246_vm15, %v2258_v14 }
0x11a8   :  { %2270 = dma.vmem_to_hbm [thread:$0]  %s2266_s14, 32, %s2268_s26, [#allocation3]  }
0x11a9   :  { %2804 = dma.done.wait [#allocation3], 32  }
0x11aa   :  { %2805 = vsyncadd [#allocation3], 4294967264 }
0x11ab   :  { %2275 = vsyncpa [#allocation3], 1 }

</bundles_post_ra>
